<compile_context>
chip_gen: v6e
topology: v6e:2x2x1
jax: 0.10.0
libtpu: 0.0.40
codegen_flags: <defaults>
</compile_context>

<pallas_src>
import functools
from typing import List, Tuple

import jax
import jax.numpy as jnp
from jax import lax
from jax.experimental import pallas as pl
from jax.experimental.pallas import tpu as pltpu


def _round_up(x: int, m: int) -> int:
    return ((x + m - 1) // m) * m


# -----------------------------------------------------------------------------
# Fused kernel: one grid step == one chunk of graphs (whole batch by default).
#   Batched LSTM recurrence -> graph-attention aggregation -> output projection.
# Row layout inside a chunk is time-major: row = t * Gc + g_local.
# -----------------------------------------------------------------------------
def _fused_batch_kernel(
    feats_ref, adj_ref,
    wih, whh, blstm,
    wx1, bx1, wx2, bx2,
    wv1, bv1, wv2, bv2,
    wz1, bz1, wz2, bz2,
    wn1, bn1, wn2, bn2,
    wos, woa, bo,
    out_ref,
    *, n_pad: int,
):
    rc = feats_ref.shape[0]                 # n_pad * Gc
    gc = rc // n_pad                        # graphs in this chunk
    hd = whh.shape[0]                       # real LSTM hidden dim

    # ---- LSTM: input projection + bias hoisted out of the recurrence -------
    gates_x = (
        jnp.dot(feats_ref[...], wih[...], preferred_element_type=jnp.float32)
        + blstm[...]
    )                                       # [Rc, 4H], time-major rows

    whh_m = whh[...]
    h = jnp.zeros((gc, hd), jnp.float32)
    c = jnp.zeros((gc, hd), jnp.float32)
    hs = []
    for t in range(n_pad):                  # fully unrolled serial chain
        g_t = gates_x[t * gc:(t + 1) * gc, :] + jnp.dot(
            h, whh_m, preferred_element_type=jnp.float32)       # [Gc, 4H]
        sig = jax.nn.sigmoid(g_t[:, :3 * hd])   # gates (i | f | o), one EUP pass
        i_g = sig[:, 0 * hd:1 * hd]
        f_g = sig[:, 1 * hd:2 * hd]
        o_g = sig[:, 2 * hd:3 * hd]
        g_g = jnp.tanh(g_t[:, 3 * hd:4 * hd])
        c = f_g * c + i_g * g_g
        h = o_g * jnp.tanh(c)
        hs.append(h)
    S = jnp.concatenate(hs, axis=0)          # [Rc, H], time-major (no VMEM trip)

    def mlp2(x, w1, b1, w2, b2):
        y = jnp.dot(x, w1[...], preferred_element_type=jnp.float32) + b1[...]
        y = jnp.maximum(y, 0.0)
        return jnp.dot(y, w2[...], preferred_element_type=jnp.float32) + b2[...]

    gx = mlp2(S, wx1, bx1, wx2, bx2)         # [Rc, M]
    gv = mlp2(S, wv1, bv1, wv2, bv2)         # [Rc, M]

    # score(i, j) = g_x(s_i) . g_v(s_j)   (contract last dims; no transpose)
    scores = lax.dot_general(
        gx, gv, (((1,), (1,)), ((), ())), preferred_element_type=jnp.float32)

    A = adj_ref[...]                         # [Rc, Rc] block-diag per graph
    rows = lax.broadcasted_iota(jnp.int32, (rc, rc), 0)
    cols = lax.broadcasted_iota(jnp.int32, (rc, rc), 1)
    mask = (A > 0) & (rows != cols)          # valid (same-graph) neighbors only

    ms = jnp.where(mask, scores, jnp.float32(-1e30))
    row_max = jnp.max(ms, axis=-1, keepdims=True)
    e = jnp.where(mask, jnp.exp(ms - row_max), 0.0)
    denom = jnp.sum(e, axis=-1, keepdims=True)
    safe = jnp.where(denom > 0.0, denom, 1.0)
    w = e * pl.reciprocal(safe, approx=True)            # masked softmax (EUP)

    summed = jnp.dot(w, S, preferred_element_type=jnp.float32)   # [Rc, H]
    z = mlp2(summed, wz1, bz1, wz2, bz2)                 # g_z
    agg = mlp2(z, wn1, bn1, wn2, bn2)                    # g_n  [Rc, O]
    agg = jnp.where(denom > 0.0, agg, 0.0)               # isolated nodes -> 0

    # lane-dense store ([Rc, O_PAD], O_PAD multiple of 128)
    out_ref[...] = (
        jnp.dot(S, wos[...], preferred_element_type=jnp.float32)
        + jnp.dot(agg, woa[...], preferred_element_type=jnp.float32)
        + bo[...]
    )


_WEIGHT_KEYS = (
    "w_ih_t", "w_hh_t", "b_lstm",
    "wx1", "bx1", "wx2", "bx2",
    "wv1", "bv1", "wv2", "bv2",
    "wz1", "bz1", "wz2", "bz2",
    "wn1", "bn1", "wn2", "bn2",
    "wos", "woa", "bo",
)


def fused_aggregator_forward(padded_params, feats_tm, adj_tm, n_pad):
    """feats_tm: [C, Rc, D], adj_tm: [C, Rc, Rc] -> [C, Rc, O_PAD]."""
    C, rc, d = feats_tm.shape
    o_pad = padded_params["bo"].shape[1]
    weights = [padded_params[k] for k in _WEIGHT_KEYS]

    def const_spec(a):
        nd = a.ndim
        return pl.BlockSpec(a.shape, lambda c, _nd=nd: (0,) * _nd)  # DMA'd once

    in_specs = [
        pl.BlockSpec((None, rc, d), lambda c: (c, 0, 0)),
        pl.BlockSpec((None, rc, rc), lambda c: (c, 0, 0)),
    ] + [const_spec(w) for w in weights]

    kernel = functools.partial(_fused_batch_kernel, n_pad=n_pad)

    return pl.pallas_call(
        kernel,
        out_shape=jax.ShapeDtypeStruct((C, rc, o_pad), jnp.float32),
        grid=(C,),
        in_specs=in_specs,
        out_specs=pl.BlockSpec((None, rc, o_pad), lambda c: (c, 0, 0)),
        compiler_params=pltpu.CompilerParams(
            dimension_semantics=("parallel",)),   # v7x: chunks across 2 TCs
    )(feats_tm, adj_tm, *weights)


# -----------------------------------------------------------------------------
# Parameters (deterministic synthetic init) + output-lane padding
# Gate column order inside the 4H block: (i | f | o | g).
# -----------------------------------------------------------------------------
def init_params(key, input_dim, lstm_hidden, mlp_hidden, output_dim):
    def uni(k, shape, fan_in):
        s = 1.0 / jnp.sqrt(jnp.float32(fan_in))
        return jax.random.uniform(k, shape, jnp.float32, -s, s)

    ks = list(jax.random.split(key, 25))
    D, H, M, O = input_dim, lstm_hidden, mlp_hidden, output_dim
    return {
        # LSTM weights stored transposed [in, 4H]; bias = b_ih + b_hh
        "w_ih_t": uni(ks[0], (D, 4 * H), H),
        "w_hh_t": uni(ks[1], (H, 4 * H), H),
        "b_lstm": uni(ks[2], (1, 4 * H), H) + uni(ks[22], (1, 4 * H), H),
        # g_x
        "wx1": uni(ks[3], (H, M), H), "bx1": uni(ks[4], (1, M), H),
        "wx2": uni(ks[5], (M, M), M), "bx2": uni(ks[6], (1, M), M),
        # g_v
        "wv1": uni(ks[7], (H, M), H), "bv1": uni(ks[8], (1, M), H),
        "wv2": uni(ks[9], (M, M), M), "bv2": uni(ks[10], (1, M), M),
        # g_z
        "wz1": uni(ks[11], (H, M), H), "bz1": uni(ks[12], (1, M), H),
        "wz2": uni(ks[13], (M, M), M), "bz2": uni(ks[14], (1, M), M),
        # g_n
        "wn1": uni(ks[15], (M, M), M), "bn1": uni(ks[16], (1, M), M),
        "wn2": uni(ks[17], (M, O), M), "bn2": uni(ks[18], (1, O), M),
        # output_projection Linear(H + O, O) split into two blocks
        "wos": uni(ks[19], (H, O), H + O),
        "woa": uni(ks[20], (O, O), H + O),
        "bo": uni(ks[21], (1, O), H + O),
    }


def pad_params(p, output_dim, o_pad):
    """Only the output projection columns are padded (lane-dense store)."""
    extra = o_pad - output_dim
    pp = dict(p)
    pp["wos"] = jnp.pad(p["wos"], ((0, 0), (0, extra)))
    pp["woa"] = jnp.pad(p["woa"], ((0, 0), (0, extra)))
    pp["bo"] = jnp.pad(p["bo"], ((0, 0), (0, extra)))
    return pp


# -----------------------------------------------------------------------------
# Module-level forward (mirrors SemanticSemanticAggregator.forward /
# EnhancedSemanticGraphFeature after the BERT+GCN front-end).
# -----------------------------------------------------------------------------
def semantic_semantic_aggregator_forward(
    padded_params, features_list: List[jnp.ndarray],
    adjacency_list: List[jnp.ndarray], n_pad: int, output_dim: int,
    num_chunks: int = 1,
) -> List[jnp.ndarray]:
    G = len(features_list)
    D = features_list[0].shape[1]
    assert G % num_chunks == 0
    gc = G // num_chunks
    rc = gc * n_pad

    feats = jnp.zeros((G, n_pad, D), jnp.float32)
    adj = jnp.zeros((G, n_pad, n_pad), jnp.float32)
    for gi, (f, a) in enumerate(zip(features_list, adjacency_list)):
        n = f.shape[0]
        feats = feats.at[gi, :n, :].set(f.astype(jnp.float32))
        adj = adj.at[gi, :n, :n].set(a.astype(jnp.float32))

    # Time-major interleave within each chunk: row = t * gc + g_local.
    feats_c = feats.reshape(num_chunks, gc, n_pad, D)
    feats_tm = jnp.transpose(feats_c, (0, 2, 1, 3)).reshape(num_chunks, rc, D)

    # Block-diagonal (per-graph) adjacency in the same interleaved ordering.
    adj_c = adj.reshape(num_chunks, gc, n_pad, n_pad)
    eye_g = jnp.eye(gc, dtype=jnp.float32)
    adj_tm = (
        jnp.transpose(adj_c, (0, 2, 1, 3))[:, :, :, :, None]
        * eye_g[None, None, :, None, :]
    ).reshape(num_chunks, rc, rc)

    out_tm = fused_aggregator_forward(padded_params, feats_tm, adj_tm, n_pad)
    o_pad = out_tm.shape[-1]

    # Un-interleave back to per-graph node order, slice real columns.
    out = out_tm.reshape(num_chunks, n_pad, gc, o_pad)
    out = jnp.transpose(out, (0, 2, 1, 3)).reshape(G, n_pad, o_pad)
    return [
        out[gi, :features_list[gi].shape[0], :output_dim] for gi in range(G)
    ]


def enhanced_semantic_graph_feature_forward(
    padded_params, features_list, adjacency_list, n_pad, output_dim,
    num_chunks: int = 1,
) -> Tuple[List[jnp.ndarray], List[jnp.ndarray]]:
    # TODO(synk): BERT/GCN stage replaced by precomputed synthetic (features, adjacency).
    final = semantic_semantic_aggregator_forward(
        padded_params, features_list, adjacency_list, n_pad, output_dim,
        num_chunks=num_chunks)
    return final, adjacency_list


# -----------------------------------------------------------------------------
# Pure-JAX reference (unpadded, per graph) for validation
# -----------------------------------------------------------------------------
def _reference_single_graph(p, feats, adj):
    H = p["w_hh_t"].shape[0]

    def cell(carry, x_t):
        h, c = carry
        g = x_t @ p["w_ih_t"] + h @ p["w_hh_t"] + p["b_lstm"][0]
        i = jax.nn.sigmoid(g[0:H])
        f = jax.nn.sigmoid(g[H:2 * H])
        o = jax.nn.sigmoid(g[2 * H:3 * H])
        gg = jnp.tanh(g[3 * H:4 * H])
        c = f * c + i * gg
        h = o * jnp.tanh(c)
        return (h, c), h

    _, S = lax.scan(cell, (jnp.zeros(H), jnp.zeros(H)), feats)

    def mlp2(x, w1, b1, w2, b2):
        return jnp.maximum(x @ w1 + b1, 0.0) @ w2 + b2

    gx = mlp2(S, p["wx1"], p["bx1"], p["wx2"], p["bx2"])
    gv = mlp2(S, p["wv1"], p["bv1"], p["wv2"], p["bv2"])
    scores = gx @ gv.T
    n = S.shape[0]
    mask = (adj > 0) & (~jnp.eye(n, dtype=bool))
    ms = jnp.where(mask, scores, -1e30)
    e = jnp.where(mask, jnp.exp(ms - ms.max(axis=-1, keepdims=True)), 0.0)
    d = e.sum(axis=-1, keepdims=True)
    w = e / jnp.where(d > 0, d, 1.0)
    summed = w @ S
    z = mlp2(summed, p["wz1"], p["bz1"], p["wz2"], p["bz2"])
    agg = mlp2(z, p["wn1"], p["bn1"], p["wn2"], p["bn2"])
    agg = jnp.where(mask.sum(axis=-1, keepdims=True) > 0, agg, 0.0)
    return S @ p["wos"] + agg @ p["woa"] + p["bo"]


# -----------------------------------------------------------------------------
# Demo
# -----------------------------------------------------------------------------
if __name__ == "__main__":
    INPUT_DIM = 32      # gcn_output_dim
    LSTM_HIDDEN = 64
    MLP_HIDDEN = 32
    OUTPUT_DIM = 32     # final_output_dim
    NODE_COUNTS = [8, 6]

    O_PAD = _round_up(OUTPUT_DIM, 128)      # lane-dense output store
    N_PAD = max(NODE_COUNTS)                # per-graph node padding
    NUM_CHUNKS = 1                          # 1 on v5e/v6e; 2 would use both v7x TCs

    key = jax.random.PRNGKey(0)
    pkey, dkey = jax.random.split(key)
    params = init_params(pkey, INPUT_DIM, LSTM_HIDDEN, MLP_HIDDEN, OUTPUT_DIM)
    padded_params = pad_params(params, OUTPUT_DIM, O_PAD)

    features_list, adjacency_list = [], []
    for gi, n in enumerate(NODE_COUNTS):
        fkey, akey = jax.random.split(jax.random.fold_in(dkey, gi))
        feats = jax.random.normal(fkey, (n, INPUT_DIM), jnp.float32)
        a = (jax.random.uniform(akey, (n, n)) > 0.5).astype(jnp.float32)
        a = a * (1.0 - jnp.eye(n, dtype=jnp.float32))   # no self loops
        features_list.append(feats)
        adjacency_list.append(a)

    final_feats, adj_out = enhanced_semantic_graph_feature_forward(
        padded_params, features_list, adjacency_list, N_PAD, OUTPUT_DIM,
        num_chunks=NUM_CHUNKS)
    final_feats = [jax.block_until_ready(f) for f in final_feats]

    ok = True
    max_diff = 0.0
    for f, feats, a, n in zip(final_feats, features_list, adjacency_list, NODE_COUNTS):
        ok &= f.shape == (n, OUTPUT_DIM)
        ok &= bool(jnp.all(jnp.isfinite(f)))
        ref = _reference_single_graph(params, feats, a)
        diff = float(jnp.max(jnp.abs(f - ref)))
        max_diff = max(max_diff, diff)
        ok &= diff < 5e-2
    if ok:
        print("KERNEL_OK")
    else:
        print(f"KERNEL_FAILED max_diff={max_diff}")
</pallas_src>

<mosaic_0001>
module attributes {stable_mosaic.version = 11 : i64} {
  func.func @_fused_batch_kernel(%arg0: i32, %arg1: memref<1x16x32xf32, #tpu.memory_space<vmem>>, %arg2: memref<1x16x16xf32, #tpu.memory_space<vmem>>, %arg3: memref<32x256xf32, #tpu.memory_space<vmem>>, %arg4: memref<64x256xf32, #tpu.memory_space<vmem>>, %arg5: memref<1x256xf32, #tpu.memory_space<vmem>>, %arg6: memref<64x32xf32, #tpu.memory_space<vmem>>, %arg7: memref<1x32xf32, #tpu.memory_space<vmem>>, %arg8: memref<32x32xf32, #tpu.memory_space<vmem>>, %arg9: memref<1x32xf32, #tpu.memory_space<vmem>>, %arg10: memref<64x32xf32, #tpu.memory_space<vmem>>, %arg11: memref<1x32xf32, #tpu.memory_space<vmem>>, %arg12: memref<32x32xf32, #tpu.memory_space<vmem>>, %arg13: memref<1x32xf32, #tpu.memory_space<vmem>>, %arg14: memref<64x32xf32, #tpu.memory_space<vmem>>, %arg15: memref<1x32xf32, #tpu.memory_space<vmem>>, %arg16: memref<32x32xf32, #tpu.memory_space<vmem>>, %arg17: memref<1x32xf32, #tpu.memory_space<vmem>>, %arg18: memref<32x32xf32, #tpu.memory_space<vmem>>, %arg19: memref<1x32xf32, #tpu.memory_space<vmem>>, %arg20: memref<32x32xf32, #tpu.memory_space<vmem>>, %arg21: memref<1x32xf32, #tpu.memory_space<vmem>>, %arg22: memref<64x128xf32, #tpu.memory_space<vmem>>, %arg23: memref<32x128xf32, #tpu.memory_space<vmem>>, %arg24: memref<1x128xf32, #tpu.memory_space<vmem>>, %arg25: memref<1x16x128xf32, #tpu.memory_space<vmem>>) attributes {dimension_semantics = [#tpu.dimension_semantics<parallel>], iteration_bounds = array<i64: 1>, scalar_prefetch = 0 : i64, scratch_operands = 0 : i64, tpu.core_type = #tpu.core_type<tc>, window_params = [{transform_indices = @transform_0, window_bounds = array<i64: 1, 16, 32>}, {transform_indices = @transform_1, window_bounds = array<i64: 1, 16, 16>}, {pipeline_mode = #tpu.pipeline_mode<synchronous>, transform_indices = @transform_2, window_bounds = array<i64: 32, 256>}, {pipeline_mode = #tpu.pipeline_mode<synchronous>, transform_indices = @transform_3, window_bounds = array<i64: 64, 256>}, {pipeline_mode = #tpu.pipeline_mode<synchronous>, transform_indices = @transform_4, window_bounds = array<i64: 1, 256>}, {pipeline_mode = #tpu.pipeline_mode<synchronous>, transform_indices = @transform_5, window_bounds = array<i64: 64, 32>}, {pipeline_mode = #tpu.pipeline_mode<synchronous>, transform_indices = @transform_6, window_bounds = array<i64: 1, 32>}, {pipeline_mode = #tpu.pipeline_mode<synchronous>, transform_indices = @transform_7, window_bounds = array<i64: 32, 32>}, {pipeline_mode = #tpu.pipeline_mode<synchronous>, transform_indices = @transform_8, window_bounds = array<i64: 1, 32>}, {pipeline_mode = #tpu.pipeline_mode<synchronous>, transform_indices = @transform_9, window_bounds = array<i64: 64, 32>}, {pipeline_mode = #tpu.pipeline_mode<synchronous>, transform_indices = @transform_10, window_bounds = array<i64: 1, 32>}, {pipeline_mode = #tpu.pipeline_mode<synchronous>, transform_indices = @transform_11, window_bounds = array<i64: 32, 32>}, {pipeline_mode = #tpu.pipeline_mode<synchronous>, transform_indices = @transform_12, window_bounds = array<i64: 1, 32>}, {pipeline_mode = #tpu.pipeline_mode<synchronous>, transform_indices = @transform_13, window_bounds = array<i64: 64, 32>}, {pipeline_mode = #tpu.pipeline_mode<synchronous>, transform_indices = @transform_14, window_bounds = array<i64: 1, 32>}, {pipeline_mode = #tpu.pipeline_mode<synchronous>, transform_indices = @transform_15, window_bounds = array<i64: 32, 32>}, {pipeline_mode = #tpu.pipeline_mode<synchronous>, transform_indices = @transform_16, window_bounds = array<i64: 1, 32>}, {pipeline_mode = #tpu.pipeline_mode<synchronous>, transform_indices = @transform_17, window_bounds = array<i64: 32, 32>}, {pipeline_mode = #tpu.pipeline_mode<synchronous>, transform_indices = @transform_18, window_bounds = array<i64: 1, 32>}, {pipeline_mode = #tpu.pipeline_mode<synchronous>, transform_indices = @transform_19, window_bounds = array<i64: 32, 32>}, {pipeline_mode = #tpu.pipeline_mode<synchronous>, transform_indices = @transform_20, window_bounds = array<i64: 1, 32>}, {pipeline_mode = #tpu.pipeline_mode<synchronous>, transform_indices = @transform_21, window_bounds = array<i64: 64, 128>}, {pipeline_mode = #tpu.pipeline_mode<synchronous>, transform_indices = @transform_22, window_bounds = array<i64: 32, 128>}, {pipeline_mode = #tpu.pipeline_mode<synchronous>, transform_indices = @transform_23, window_bounds = array<i64: 1, 128>}, {transform_indices = @transform_24, window_bounds = array<i64: 1, 16, 128>}]} {
    %c0 = arith.constant 0 : index
    %c0_0 = arith.constant 0 : index
    %c0_1 = arith.constant 0 : index
    %0 = vector.load %arg1[%c0, %c0_0, %c0_1] : memref<1x16x32xf32, #tpu.memory_space<vmem>>, vector<1x16x32xf32>
    %1 = vector.shape_cast %0 : vector<1x16x32xf32> to vector<16x32xf32>
    %c0_2 = arith.constant 0 : index
    %c0_3 = arith.constant 0 : index
    %2 = vector.load %arg3[%c0_2, %c0_3] : memref<32x256xf32, #tpu.memory_space<vmem>>, vector<32x256xf32>
    %cst = arith.constant dense<0.000000e+00> : vector<16x256xf32>
    %3 = tpu.matmul %1, %2, %cst {dimension_numbers = #tpu.dot_dimension_numbers<[1], [0], [0], [1], [0, 0, 1, 1], [], []>} : vector<16x32xf32>, vector<32x256xf32>, vector<16x256xf32> -> vector<16x256xf32>
    %c0_4 = arith.constant 0 : index
    %c0_5 = arith.constant 0 : index
    %4 = vector.load %arg5[%c0_4, %c0_5] : memref<1x256xf32, #tpu.memory_space<vmem>>, vector<1x256xf32>
    %5 = vector.broadcast %4 : vector<1x256xf32> to vector<16x256xf32>
    %6 = arith.addf %3, %5 : vector<16x256xf32>
    %c0_6 = arith.constant 0 : index
    %c0_7 = arith.constant 0 : index
    %7 = vector.load %arg4[%c0_6, %c0_7] : memref<64x256xf32, #tpu.memory_space<vmem>>, vector<64x256xf32>
    %cst_8 = arith.constant 0.000000e+00 : f32
    %8 = vector.broadcast %cst_8 : f32 to vector<2x64xf32>
    %cst_9 = arith.constant 0.000000e+00 : f32
    %9 = vector.broadcast %cst_9 : f32 to vector<2x64xf32>
    %10 = vector.extract_strided_slice %6 {offsets = [0, 0], sizes = [2, 256], strides = [1, 1]} : vector<16x256xf32> to vector<2x256xf32>
    %cst_10 = arith.constant dense<0.000000e+00> : vector<2x256xf32>
    %11 = tpu.matmul %8, %7, %cst_10 {dimension_numbers = #tpu.dot_dimension_numbers<[1], [0], [0], [1], [0, 0, 1, 1], [], []>} : vector<2x64xf32>, vector<64x256xf32>, vector<2x256xf32> -> vector<2x256xf32>
    %12 = arith.addf %10, %11 : vector<2x256xf32>
    %13 = vector.extract_strided_slice %12 {offsets = [0, 0], sizes = [2, 192], strides = [1, 1]} : vector<2x256xf32> to vector<2x192xf32>
    %14 = arith.negf %13 : vector<2x192xf32>
    %15 = math.exp %14 : vector<2x192xf32>
    %cst_11 = arith.constant 1.000000e+00 : f32
    %16 = vector.broadcast %cst_11 : f32 to vector<2x192xf32>
    %17 = arith.addf %16, %15 : vector<2x192xf32>
    %18 = arith.divf %16, %17 : vector<2x192xf32>
    %19 = vector.extract_strided_slice %18 {offsets = [0, 0], sizes = [2, 64], strides = [1, 1]} : vector<2x192xf32> to vector<2x64xf32>
    %20 = vector.extract_strided_slice %18 {offsets = [0, 64], sizes = [2, 64], strides = [1, 1]} : vector<2x192xf32> to vector<2x64xf32>
    %21 = vector.extract_strided_slice %18 {offsets = [0, 128], sizes = [2, 64], strides = [1, 1]} : vector<2x192xf32> to vector<2x64xf32>
    %22 = vector.extract_strided_slice %12 {offsets = [0, 192], sizes = [2, 64], strides = [1, 1]} : vector<2x256xf32> to vector<2x64xf32>
    %23 = math.tanh %22 : vector<2x64xf32>
    %24 = arith.mulf %20, %9 : vector<2x64xf32>
    %25 = arith.mulf %19, %23 : vector<2x64xf32>
    %26 = arith.addf %24, %25 : vector<2x64xf32>
    %27 = math.tanh %26 : vector<2x64xf32>
    %28 = arith.mulf %21, %27 : vector<2x64xf32>
    %29 = vector.extract_strided_slice %6 {offsets = [2, 0], sizes = [2, 256], strides = [1, 1]} : vector<16x256xf32> to vector<2x256xf32>
    %cst_12 = arith.constant dense<0.000000e+00> : vector<2x256xf32>
    %30 = tpu.matmul %28, %7, %cst_12 {dimension_numbers = #tpu.dot_dimension_numbers<[1], [0], [0], [1], [0, 0, 1, 1], [], []>} : vector<2x64xf32>, vector<64x256xf32>, vector<2x256xf32> -> vector<2x256xf32>
    %31 = arith.addf %29, %30 : vector<2x256xf32>
    %32 = vector.extract_strided_slice %31 {offsets = [0, 0], sizes = [2, 192], strides = [1, 1]} : vector<2x256xf32> to vector<2x192xf32>
    %33 = arith.negf %32 : vector<2x192xf32>
    %34 = math.exp %33 : vector<2x192xf32>
    %cst_13 = arith.constant 1.000000e+00 : f32
    %35 = vector.broadcast %cst_13 : f32 to vector<2x192xf32>
    %36 = arith.addf %35, %34 : vector<2x192xf32>
    %37 = arith.divf %35, %36 : vector<2x192xf32>
    %38 = vector.extract_strided_slice %37 {offsets = [0, 0], sizes = [2, 64], strides = [1, 1]} : vector<2x192xf32> to vector<2x64xf32>
    %39 = vector.extract_strided_slice %37 {offsets = [0, 64], sizes = [2, 64], strides = [1, 1]} : vector<2x192xf32> to vector<2x64xf32>
    %40 = vector.extract_strided_slice %37 {offsets = [0, 128], sizes = [2, 64], strides = [1, 1]} : vector<2x192xf32> to vector<2x64xf32>
    %41 = vector.extract_strided_slice %31 {offsets = [0, 192], sizes = [2, 64], strides = [1, 1]} : vector<2x256xf32> to vector<2x64xf32>
    %42 = math.tanh %41 : vector<2x64xf32>
    %43 = arith.mulf %39, %26 : vector<2x64xf32>
    %44 = arith.mulf %38, %42 : vector<2x64xf32>
    %45 = arith.addf %43, %44 : vector<2x64xf32>
    %46 = math.tanh %45 : vector<2x64xf32>
    %47 = arith.mulf %40, %46 : vector<2x64xf32>
    %48 = vector.extract_strided_slice %6 {offsets = [4, 0], sizes = [2, 256], strides = [1, 1]} : vector<16x256xf32> to vector<2x256xf32>
    %cst_14 = arith.constant dense<0.000000e+00> : vector<2x256xf32>
    %49 = tpu.matmul %47, %7, %cst_14 {dimension_numbers = #tpu.dot_dimension_numbers<[1], [0], [0], [1], [0, 0, 1, 1], [], []>} : vector<2x64xf32>, vector<64x256xf32>, vector<2x256xf32> -> vector<2x256xf32>
    %50 = arith.addf %48, %49 : vector<2x256xf32>
    %51 = vector.extract_strided_slice %50 {offsets = [0, 0], sizes = [2, 192], strides = [1, 1]} : vector<2x256xf32> to vector<2x192xf32>
    %52 = arith.negf %51 : vector<2x192xf32>
    %53 = math.exp %52 : vector<2x192xf32>
    %cst_15 = arith.constant 1.000000e+00 : f32
    %54 = vector.broadcast %cst_15 : f32 to vector<2x192xf32>
    %55 = arith.addf %54, %53 : vector<2x192xf32>
    %56 = arith.divf %54, %55 : vector<2x192xf32>
    %57 = vector.extract_strided_slice %56 {offsets = [0, 0], sizes = [2, 64], strides = [1, 1]} : vector<2x192xf32> to vector<2x64xf32>
    %58 = vector.extract_strided_slice %56 {offsets = [0, 64], sizes = [2, 64], strides = [1, 1]} : vector<2x192xf32> to vector<2x64xf32>
    %59 = vector.extract_strided_slice %56 {offsets = [0, 128], sizes = [2, 64], strides = [1, 1]} : vector<2x192xf32> to vector<2x64xf32>
    %60 = vector.extract_strided_slice %50 {offsets = [0, 192], sizes = [2, 64], strides = [1, 1]} : vector<2x256xf32> to vector<2x64xf32>
    %61 = math.tanh %60 : vector<2x64xf32>
    %62 = arith.mulf %58, %45 : vector<2x64xf32>
    %63 = arith.mulf %57, %61 : vector<2x64xf32>
    %64 = arith.addf %62, %63 : vector<2x64xf32>
    %65 = math.tanh %64 : vector<2x64xf32>
    %66 = arith.mulf %59, %65 : vector<2x64xf32>
    %67 = vector.extract_strided_slice %6 {offsets = [6, 0], sizes = [2, 256], strides = [1, 1]} : vector<16x256xf32> to vector<2x256xf32>
    %cst_16 = arith.constant dense<0.000000e+00> : vector<2x256xf32>
    %68 = tpu.matmul %66, %7, %cst_16 {dimension_numbers = #tpu.dot_dimension_numbers<[1], [0], [0], [1], [0, 0, 1, 1], [], []>} : vector<2x64xf32>, vector<64x256xf32>, vector<2x256xf32> -> vector<2x256xf32>
    %69 = arith.addf %67, %68 : vector<2x256xf32>
    %70 = vector.extract_strided_slice %69 {offsets = [0, 0], sizes = [2, 192], strides = [1, 1]} : vector<2x256xf32> to vector<2x192xf32>
    %71 = arith.negf %70 : vector<2x192xf32>
    %72 = math.exp %71 : vector<2x192xf32>
    %cst_17 = arith.constant 1.000000e+00 : f32
    %73 = vector.broadcast %cst_17 : f32 to vector<2x192xf32>
    %74 = arith.addf %73, %72 : vector<2x192xf32>
    %75 = arith.divf %73, %74 : vector<2x192xf32>
    %76 = vector.extract_strided_slice %75 {offsets = [0, 0], sizes = [2, 64], strides = [1, 1]} : vector<2x192xf32> to vector<2x64xf32>
    %77 = vector.extract_strided_slice %75 {offsets = [0, 64], sizes = [2, 64], strides = [1, 1]} : vector<2x192xf32> to vector<2x64xf32>
    %78 = vector.extract_strided_slice %75 {offsets = [0, 128], sizes = [2, 64], strides = [1, 1]} : vector<2x192xf32> to vector<2x64xf32>
    %79 = vector.extract_strided_slice %69 {offsets = [0, 192], sizes = [2, 64], strides = [1, 1]} : vector<2x256xf32> to vector<2x64xf32>
    %80 = math.tanh %79 : vector<2x64xf32>
    %81 = arith.mulf %77, %64 : vector<2x64xf32>
    %82 = arith.mulf %76, %80 : vector<2x64xf32>
    %83 = arith.addf %81, %82 : vector<2x64xf32>
    %84 = math.tanh %83 : vector<2x64xf32>
    %85 = arith.mulf %78, %84 : vector<2x64xf32>
    %86 = vector.extract_strided_slice %6 {offsets = [8, 0], sizes = [2, 256], strides = [1, 1]} : vector<16x256xf32> to vector<2x256xf32>
    %cst_18 = arith.constant dense<0.000000e+00> : vector<2x256xf32>
    %87 = tpu.matmul %85, %7, %cst_18 {dimension_numbers = #tpu.dot_dimension_numbers<[1], [0], [0], [1], [0, 0, 1, 1], [], []>} : vector<2x64xf32>, vector<64x256xf32>, vector<2x256xf32> -> vector<2x256xf32>
    %88 = arith.addf %86, %87 : vector<2x256xf32>
    %89 = vector.extract_strided_slice %88 {offsets = [0, 0], sizes = [2, 192], strides = [1, 1]} : vector<2x256xf32> to vector<2x192xf32>
    %90 = arith.negf %89 : vector<2x192xf32>
    %91 = math.exp %90 : vector<2x192xf32>
    %cst_19 = arith.constant 1.000000e+00 : f32
    %92 = vector.broadcast %cst_19 : f32 to vector<2x192xf32>
    %93 = arith.addf %92, %91 : vector<2x192xf32>
    %94 = arith.divf %92, %93 : vector<2x192xf32>
    %95 = vector.extract_strided_slice %94 {offsets = [0, 0], sizes = [2, 64], strides = [1, 1]} : vector<2x192xf32> to vector<2x64xf32>
    %96 = vector.extract_strided_slice %94 {offsets = [0, 64], sizes = [2, 64], strides = [1, 1]} : vector<2x192xf32> to vector<2x64xf32>
    %97 = vector.extract_strided_slice %94 {offsets = [0, 128], sizes = [2, 64], strides = [1, 1]} : vector<2x192xf32> to vector<2x64xf32>
    %98 = vector.extract_strided_slice %88 {offsets = [0, 192], sizes = [2, 64], strides = [1, 1]} : vector<2x256xf32> to vector<2x64xf32>
    %99 = math.tanh %98 : vector<2x64xf32>
    %100 = arith.mulf %96, %83 : vector<2x64xf32>
    %101 = arith.mulf %95, %99 : vector<2x64xf32>
    %102 = arith.addf %100, %101 : vector<2x64xf32>
    %103 = math.tanh %102 : vector<2x64xf32>
    %104 = arith.mulf %97, %103 : vector<2x64xf32>
    %105 = vector.extract_strided_slice %6 {offsets = [10, 0], sizes = [2, 256], strides = [1, 1]} : vector<16x256xf32> to vector<2x256xf32>
    %cst_20 = arith.constant dense<0.000000e+00> : vector<2x256xf32>
    %106 = tpu.matmul %104, %7, %cst_20 {dimension_numbers = #tpu.dot_dimension_numbers<[1], [0], [0], [1], [0, 0, 1, 1], [], []>} : vector<2x64xf32>, vector<64x256xf32>, vector<2x256xf32> -> vector<2x256xf32>
    %107 = arith.addf %105, %106 : vector<2x256xf32>
    %108 = vector.extract_strided_slice %107 {offsets = [0, 0], sizes = [2, 192], strides = [1, 1]} : vector<2x256xf32> to vector<2x192xf32>
    %109 = arith.negf %108 : vector<2x192xf32>
    %110 = math.exp %109 : vector<2x192xf32>
    %cst_21 = arith.constant 1.000000e+00 : f32
    %111 = vector.broadcast %cst_21 : f32 to vector<2x192xf32>
    %112 = arith.addf %111, %110 : vector<2x192xf32>
    %113 = arith.divf %111, %112 : vector<2x192xf32>
    %114 = vector.extract_strided_slice %113 {offsets = [0, 0], sizes = [2, 64], strides = [1, 1]} : vector<2x192xf32> to vector<2x64xf32>
    %115 = vector.extract_strided_slice %113 {offsets = [0, 64], sizes = [2, 64], strides = [1, 1]} : vector<2x192xf32> to vector<2x64xf32>
    %116 = vector.extract_strided_slice %113 {offsets = [0, 128], sizes = [2, 64], strides = [1, 1]} : vector<2x192xf32> to vector<2x64xf32>
    %117 = vector.extract_strided_slice %107 {offsets = [0, 192], sizes = [2, 64], strides = [1, 1]} : vector<2x256xf32> to vector<2x64xf32>
    %118 = math.tanh %117 : vector<2x64xf32>
    %119 = arith.mulf %115, %102 : vector<2x64xf32>
    %120 = arith.mulf %114, %118 : vector<2x64xf32>
    %121 = arith.addf %119, %120 : vector<2x64xf32>
    %122 = math.tanh %121 : vector<2x64xf32>
    %123 = arith.mulf %116, %122 : vector<2x64xf32>
    %124 = vector.extract_strided_slice %6 {offsets = [12, 0], sizes = [2, 256], strides = [1, 1]} : vector<16x256xf32> to vector<2x256xf32>
    %cst_22 = arith.constant dense<0.000000e+00> : vector<2x256xf32>
    %125 = tpu.matmul %123, %7, %cst_22 {dimension_numbers = #tpu.dot_dimension_numbers<[1], [0], [0], [1], [0, 0, 1, 1], [], []>} : vector<2x64xf32>, vector<64x256xf32>, vector<2x256xf32> -> vector<2x256xf32>
    %126 = arith.addf %124, %125 : vector<2x256xf32>
    %127 = vector.extract_strided_slice %126 {offsets = [0, 0], sizes = [2, 192], strides = [1, 1]} : vector<2x256xf32> to vector<2x192xf32>
    %128 = arith.negf %127 : vector<2x192xf32>
    %129 = math.exp %128 : vector<2x192xf32>
    %cst_23 = arith.constant 1.000000e+00 : f32
    %130 = vector.broadcast %cst_23 : f32 to vector<2x192xf32>
    %131 = arith.addf %130, %129 : vector<2x192xf32>
    %132 = arith.divf %130, %131 : vector<2x192xf32>
    %133 = vector.extract_strided_slice %132 {offsets = [0, 0], sizes = [2, 64], strides = [1, 1]} : vector<2x192xf32> to vector<2x64xf32>
    %134 = vector.extract_strided_slice %132 {offsets = [0, 64], sizes = [2, 64], strides = [1, 1]} : vector<2x192xf32> to vector<2x64xf32>
    %135 = vector.extract_strided_slice %132 {offsets = [0, 128], sizes = [2, 64], strides = [1, 1]} : vector<2x192xf32> to vector<2x64xf32>
    %136 = vector.extract_strided_slice %126 {offsets = [0, 192], sizes = [2, 64], strides = [1, 1]} : vector<2x256xf32> to vector<2x64xf32>
    %137 = math.tanh %136 : vector<2x64xf32>
    %138 = arith.mulf %134, %121 : vector<2x64xf32>
    %139 = arith.mulf %133, %137 : vector<2x64xf32>
    %140 = arith.addf %138, %139 : vector<2x64xf32>
    %141 = math.tanh %140 : vector<2x64xf32>
    %142 = arith.mulf %135, %141 : vector<2x64xf32>
    %143 = vector.extract_strided_slice %6 {offsets = [14, 0], sizes = [2, 256], strides = [1, 1]} : vector<16x256xf32> to vector<2x256xf32>
    %cst_24 = arith.constant dense<0.000000e+00> : vector<2x256xf32>
    %144 = tpu.matmul %142, %7, %cst_24 {dimension_numbers = #tpu.dot_dimension_numbers<[1], [0], [0], [1], [0, 0, 1, 1], [], []>} : vector<2x64xf32>, vector<64x256xf32>, vector<2x256xf32> -> vector<2x256xf32>
    %145 = arith.addf %143, %144 : vector<2x256xf32>
    %146 = vector.extract_strided_slice %145 {offsets = [0, 0], sizes = [2, 192], strides = [1, 1]} : vector<2x256xf32> to vector<2x192xf32>
    %147 = arith.negf %146 : vector<2x192xf32>
    %148 = math.exp %147 : vector<2x192xf32>
    %cst_25 = arith.constant 1.000000e+00 : f32
    %149 = vector.broadcast %cst_25 : f32 to vector<2x192xf32>
    %150 = arith.addf %149, %148 : vector<2x192xf32>
    %151 = arith.divf %149, %150 : vector<2x192xf32>
    %152 = vector.extract_strided_slice %151 {offsets = [0, 0], sizes = [2, 64], strides = [1, 1]} : vector<2x192xf32> to vector<2x64xf32>
    %153 = vector.extract_strided_slice %151 {offsets = [0, 64], sizes = [2, 64], strides = [1, 1]} : vector<2x192xf32> to vector<2x64xf32>
    %154 = vector.extract_strided_slice %151 {offsets = [0, 128], sizes = [2, 64], strides = [1, 1]} : vector<2x192xf32> to vector<2x64xf32>
    %155 = vector.extract_strided_slice %145 {offsets = [0, 192], sizes = [2, 64], strides = [1, 1]} : vector<2x256xf32> to vector<2x64xf32>
    %156 = math.tanh %155 : vector<2x64xf32>
    %157 = arith.mulf %153, %140 : vector<2x64xf32>
    %158 = arith.mulf %152, %156 : vector<2x64xf32>
    %159 = arith.addf %157, %158 : vector<2x64xf32>
    %160 = math.tanh %159 : vector<2x64xf32>
    %161 = arith.mulf %154, %160 : vector<2x64xf32>
    %162 = tpu.concatenate %28, %47, %66, %85, %104, %123, %142, %161 in 0 : vector<2x64xf32>, vector<2x64xf32>, vector<2x64xf32>, vector<2x64xf32>, vector<2x64xf32>, vector<2x64xf32>, vector<2x64xf32>, vector<2x64xf32> -> vector<16x64xf32>
    %c0_26 = arith.constant 0 : index
    %c0_27 = arith.constant 0 : index
    %163 = vector.load %arg6[%c0_26, %c0_27] : memref<64x32xf32, #tpu.memory_space<vmem>>, vector<64x32xf32>
    %cst_28 = arith.constant dense<0.000000e+00> : vector<16x32xf32>
    %164 = tpu.matmul %162, %163, %cst_28 {dimension_numbers = #tpu.dot_dimension_numbers<[1], [0], [0], [1], [0, 0, 1, 1], [], []>} : vector<16x64xf32>, vector<64x32xf32>, vector<16x32xf32> -> vector<16x32xf32>
    %c0_29 = arith.constant 0 : index
    %c0_30 = arith.constant 0 : index
    %165 = vector.load %arg7[%c0_29, %c0_30] : memref<1x32xf32, #tpu.memory_space<vmem>>, vector<1x32xf32>
    %166 = vector.broadcast %165 : vector<1x32xf32> to vector<16x32xf32>
    %167 = arith.addf %164, %166 : vector<16x32xf32>
    %cst_31 = arith.constant 0.000000e+00 : f32
    %168 = vector.broadcast %cst_31 : f32 to vector<16x32xf32>
    %169 = arith.maximumf %167, %168 : vector<16x32xf32>
    %c0_32 = arith.constant 0 : index
    %c0_33 = arith.constant 0 : index
    %170 = vector.load %arg8[%c0_32, %c0_33] : memref<32x32xf32, #tpu.memory_space<vmem>>, vector<32x32xf32>
    %cst_34 = arith.constant dense<0.000000e+00> : vector<16x32xf32>
    %171 = tpu.matmul %169, %170, %cst_34 {dimension_numbers = #tpu.dot_dimension_numbers<[1], [0], [0], [1], [0, 0, 1, 1], [], []>} : vector<16x32xf32>, vector<32x32xf32>, vector<16x32xf32> -> vector<16x32xf32>
    %c0_35 = arith.constant 0 : index
    %c0_36 = arith.constant 0 : index
    %172 = vector.load %arg9[%c0_35, %c0_36] : memref<1x32xf32, #tpu.memory_space<vmem>>, vector<1x32xf32>
    %173 = vector.broadcast %172 : vector<1x32xf32> to vector<16x32xf32>
    %174 = arith.addf %171, %173 : vector<16x32xf32>
    %c0_37 = arith.constant 0 : index
    %c0_38 = arith.constant 0 : index
    %175 = vector.load %arg10[%c0_37, %c0_38] : memref<64x32xf32, #tpu.memory_space<vmem>>, vector<64x32xf32>
    %cst_39 = arith.constant dense<0.000000e+00> : vector<16x32xf32>
    %176 = tpu.matmul %162, %175, %cst_39 {dimension_numbers = #tpu.dot_dimension_numbers<[1], [0], [0], [1], [0, 0, 1, 1], [], []>} : vector<16x64xf32>, vector<64x32xf32>, vector<16x32xf32> -> vector<16x32xf32>
    %c0_40 = arith.constant 0 : index
    %c0_41 = arith.constant 0 : index
    %177 = vector.load %arg11[%c0_40, %c0_41] : memref<1x32xf32, #tpu.memory_space<vmem>>, vector<1x32xf32>
    %178 = vector.broadcast %177 : vector<1x32xf32> to vector<16x32xf32>
    %179 = arith.addf %176, %178 : vector<16x32xf32>
    %cst_42 = arith.constant 0.000000e+00 : f32
    %180 = vector.broadcast %cst_42 : f32 to vector<16x32xf32>
    %181 = arith.maximumf %179, %180 : vector<16x32xf32>
    %c0_43 = arith.constant 0 : index
    %c0_44 = arith.constant 0 : index
    %182 = vector.load %arg12[%c0_43, %c0_44] : memref<32x32xf32, #tpu.memory_space<vmem>>, vector<32x32xf32>
    %cst_45 = arith.constant dense<0.000000e+00> : vector<16x32xf32>
    %183 = tpu.matmul %181, %182, %cst_45 {dimension_numbers = #tpu.dot_dimension_numbers<[1], [0], [0], [1], [0, 0, 1, 1], [], []>} : vector<16x32xf32>, vector<32x32xf32>, vector<16x32xf32> -> vector<16x32xf32>
    %c0_46 = arith.constant 0 : index
    %c0_47 = arith.constant 0 : index
    %184 = vector.load %arg13[%c0_46, %c0_47] : memref<1x32xf32, #tpu.memory_space<vmem>>, vector<1x32xf32>
    %185 = vector.broadcast %184 : vector<1x32xf32> to vector<16x32xf32>
    %186 = arith.addf %183, %185 : vector<16x32xf32>
    %cst_48 = arith.constant dense<0.000000e+00> : vector<16x16xf32>
    %187 = tpu.matmul %174, %186, %cst_48 {dimension_numbers = #tpu.dot_dimension_numbers<[1], [1], [0], [0], [0, 0, 1, 0], [], []>} : vector<16x32xf32>, vector<16x32xf32>, vector<16x16xf32> -> vector<16x16xf32>
    %c0_49 = arith.constant 0 : index
    %c0_50 = arith.constant 0 : index
    %c0_51 = arith.constant 0 : index
    %188 = vector.load %arg2[%c0_49, %c0_50, %c0_51] : memref<1x16x16xf32, #tpu.memory_space<vmem>>, vector<1x16x16xf32>
    %189 = vector.shape_cast %188 : vector<1x16x16xf32> to vector<16x16xf32>
    %190 = tpu.iota {dimensions = array<i32: 0>} : vector<16x16xi32>
    %191 = tpu.iota {dimensions = array<i32: 1>} : vector<16x16xi32>
    %cst_52 = arith.constant 0.000000e+00 : f32
    %192 = vector.broadcast %cst_52 : f32 to vector<16x16xf32>
    %193 = arith.cmpf ogt, %189, %192 : vector<16x16xf32>
    %194 = arith.cmpi ne, %190, %191 : vector<16x16xi32>
    %195 = arith.andi %193, %194 : vector<16x16xi1>
    %cst_53 = arith.constant -1.000000e+30 : f32
    %196 = vector.broadcast %cst_53 : f32 to vector<16x16xf32>
    %197 = arith.select %195, %187, %196 : vector<16x16xi1>, vector<16x16xf32>
    %cst_54 = arith.constant dense<0xFF800000> : vector<16xf32>
    %198 = vector.multi_reduction <maximumf>, %197, %cst_54 [1] : vector<16x16xf32> to vector<16xf32>
    %199 = vector.shape_cast %198 : vector<16xf32> to vector<16x1xf32>
    %200 = vector.broadcast %199 : vector<16x1xf32> to vector<16x16xf32>
    %201 = arith.subf %197, %200 : vector<16x16xf32>
    %202 = math.exp %201 : vector<16x16xf32>
    %cst_55 = arith.constant 0.000000e+00 : f32
    %203 = vector.broadcast %cst_55 : f32 to vector<16x16xf32>
    %204 = arith.select %195, %202, %203 : vector<16x16xi1>, vector<16x16xf32>
    %cst_56 = arith.constant dense<0.000000e+00> : vector<16xf32>
    %205 = vector.multi_reduction <add>, %204, %cst_56 [1] : vector<16x16xf32> to vector<16xf32>
    %206 = vector.shape_cast %205 : vector<16xf32> to vector<16x1xf32>
    %cst_57 = arith.constant 0.000000e+00 : f32
    %207 = vector.broadcast %cst_57 : f32 to vector<16x1xf32>
    %208 = arith.cmpf ogt, %206, %207 : vector<16x1xf32>
    %cst_58 = arith.constant 1.000000e+00 : f32
    %209 = vector.broadcast %cst_58 : f32 to vector<16x1xf32>
    %210 = arith.select %208, %206, %209 : vector<16x1xi1>, vector<16x1xf32>
    %211 = tpu.reciprocal %210 {approx = true} : vector<16x1xf32> -> vector<16x1xf32>
    %212 = vector.broadcast %211 : vector<16x1xf32> to vector<16x16xf32>
    %213 = arith.mulf %204, %212 : vector<16x16xf32>
    %cst_59 = arith.constant dense<0.000000e+00> : vector<16x64xf32>
    %214 = tpu.matmul %213, %162, %cst_59 {dimension_numbers = #tpu.dot_dimension_numbers<[1], [0], [0], [1], [0, 0, 1, 1], [], []>} : vector<16x16xf32>, vector<16x64xf32>, vector<16x64xf32> -> vector<16x64xf32>
    %c0_60 = arith.constant 0 : index
    %c0_61 = arith.constant 0 : index
    %215 = vector.load %arg14[%c0_60, %c0_61] : memref<64x32xf32, #tpu.memory_space<vmem>>, vector<64x32xf32>
    %cst_62 = arith.constant dense<0.000000e+00> : vector<16x32xf32>
    %216 = tpu.matmul %214, %215, %cst_62 {dimension_numbers = #tpu.dot_dimension_numbers<[1], [0], [0], [1], [0, 0, 1, 1], [], []>} : vector<16x64xf32>, vector<64x32xf32>, vector<16x32xf32> -> vector<16x32xf32>
    %c0_63 = arith.constant 0 : index
    %c0_64 = arith.constant 0 : index
    %217 = vector.load %arg15[%c0_63, %c0_64] : memref<1x32xf32, #tpu.memory_space<vmem>>, vector<1x32xf32>
    %218 = vector.broadcast %217 : vector<1x32xf32> to vector<16x32xf32>
    %219 = arith.addf %216, %218 : vector<16x32xf32>
    %cst_65 = arith.constant 0.000000e+00 : f32
    %220 = vector.broadcast %cst_65 : f32 to vector<16x32xf32>
    %221 = arith.maximumf %219, %220 : vector<16x32xf32>
    %c0_66 = arith.constant 0 : index
    %c0_67 = arith.constant 0 : index
    %222 = vector.load %arg16[%c0_66, %c0_67] : memref<32x32xf32, #tpu.memory_space<vmem>>, vector<32x32xf32>
    %cst_68 = arith.constant dense<0.000000e+00> : vector<16x32xf32>
    %223 = tpu.matmul %221, %222, %cst_68 {dimension_numbers = #tpu.dot_dimension_numbers<[1], [0], [0], [1], [0, 0, 1, 1], [], []>} : vector<16x32xf32>, vector<32x32xf32>, vector<16x32xf32> -> vector<16x32xf32>
    %c0_69 = arith.constant 0 : index
    %c0_70 = arith.constant 0 : index
    %224 = vector.load %arg17[%c0_69, %c0_70] : memref<1x32xf32, #tpu.memory_space<vmem>>, vector<1x32xf32>
    %225 = vector.broadcast %224 : vector<1x32xf32> to vector<16x32xf32>
    %226 = arith.addf %223, %225 : vector<16x32xf32>
    %c0_71 = arith.constant 0 : index
    %c0_72 = arith.constant 0 : index
    %227 = vector.load %arg18[%c0_71, %c0_72] : memref<32x32xf32, #tpu.memory_space<vmem>>, vector<32x32xf32>
    %cst_73 = arith.constant dense<0.000000e+00> : vector<16x32xf32>
    %228 = tpu.matmul %226, %227, %cst_73 {dimension_numbers = #tpu.dot_dimension_numbers<[1], [0], [0], [1], [0, 0, 1, 1], [], []>} : vector<16x32xf32>, vector<32x32xf32>, vector<16x32xf32> -> vector<16x32xf32>
    %c0_74 = arith.constant 0 : index
    %c0_75 = arith.constant 0 : index
    %229 = vector.load %arg19[%c0_74, %c0_75] : memref<1x32xf32, #tpu.memory_space<vmem>>, vector<1x32xf32>
    %230 = vector.broadcast %229 : vector<1x32xf32> to vector<16x32xf32>
    %231 = arith.addf %228, %230 : vector<16x32xf32>
    %cst_76 = arith.constant 0.000000e+00 : f32
    %232 = vector.broadcast %cst_76 : f32 to vector<16x32xf32>
    %233 = arith.maximumf %231, %232 : vector<16x32xf32>
    %c0_77 = arith.constant 0 : index
    %c0_78 = arith.constant 0 : index
    %234 = vector.load %arg20[%c0_77, %c0_78] : memref<32x32xf32, #tpu.memory_space<vmem>>, vector<32x32xf32>
    %cst_79 = arith.constant dense<0.000000e+00> : vector<16x32xf32>
    %235 = tpu.matmul %233, %234, %cst_79 {dimension_numbers = #tpu.dot_dimension_numbers<[1], [0], [0], [1], [0, 0, 1, 1], [], []>} : vector<16x32xf32>, vector<32x32xf32>, vector<16x32xf32> -> vector<16x32xf32>
    %c0_80 = arith.constant 0 : index
    %c0_81 = arith.constant 0 : index
    %236 = vector.load %arg21[%c0_80, %c0_81] : memref<1x32xf32, #tpu.memory_space<vmem>>, vector<1x32xf32>
    %237 = vector.broadcast %236 : vector<1x32xf32> to vector<16x32xf32>
    %238 = arith.addf %235, %237 : vector<16x32xf32>
    %cst_82 = arith.constant 0.000000e+00 : f32
    %239 = vector.broadcast %cst_82 : f32 to vector<16x1xf32>
    %240 = arith.cmpf ogt, %206, %239 : vector<16x1xf32>
    %cst_83 = arith.constant 0.000000e+00 : f32
    %241 = vector.shape_cast %240 : vector<16x1xi1> to vector<16x1xi1>
    %242 = vector.broadcast %241 : vector<16x1xi1> to vector<16x32xi1>
    %243 = vector.broadcast %cst_83 : f32 to vector<16x32xf32>
    %244 = arith.select %242, %238, %243 : vector<16x32xi1>, vector<16x32xf32>
    %c0_84 = arith.constant 0 : index
    %c0_85 = arith.constant 0 : index
    %245 = vector.load %arg22[%c0_84, %c0_85] : memref<64x128xf32, #tpu.memory_space<vmem>>, vector<64x128xf32>
    %cst_86 = arith.constant dense<0.000000e+00> : vector<16x128xf32>
    %246 = tpu.matmul %162, %245, %cst_86 {dimension_numbers = #tpu.dot_dimension_numbers<[1], [0], [0], [1], [0, 0, 1, 1], [], []>} : vector<16x64xf32>, vector<64x128xf32>, vector<16x128xf32> -> vector<16x128xf32>
    %c0_87 = arith.constant 0 : index
    %c0_88 = arith.constant 0 : index
    %247 = vector.load %arg23[%c0_87, %c0_88] : memref<32x128xf32, #tpu.memory_space<vmem>>, vector<32x128xf32>
    %cst_89 = arith.constant dense<0.000000e+00> : vector<16x128xf32>
    %248 = tpu.matmul %244, %247, %cst_89 {dimension_numbers = #tpu.dot_dimension_numbers<[1], [0], [0], [1], [0, 0, 1, 1], [], []>} : vector<16x32xf32>, vector<32x128xf32>, vector<16x128xf32> -> vector<16x128xf32>
    %249 = arith.addf %246, %248 : vector<16x128xf32>
    %c0_90 = arith.constant 0 : index
    %c0_91 = arith.constant 0 : index
    %250 = vector.load %arg24[%c0_90, %c0_91] : memref<1x128xf32, #tpu.memory_space<vmem>>, vector<1x128xf32>
    %251 = vector.broadcast %250 : vector<1x128xf32> to vector<16x128xf32>
    %252 = arith.addf %249, %251 : vector<16x128xf32>
    %c0_92 = arith.constant 0 : index
    %c0_93 = arith.constant 0 : index
    %c0_94 = arith.constant 0 : index
    %253 = vector.load %arg25[%c0_92, %c0_93, %c0_94] : memref<1x16x128xf32, #tpu.memory_space<vmem>>, vector<1x16x128xf32>
    %254 = vector.shape_cast %253 : vector<1x16x128xf32> to vector<16x128xf32>
    %255 = vector.shape_cast %252 : vector<16x128xf32> to vector<1x16x128xf32>
    tpu.vector_store %arg25[%c0_92, %c0_93, %c0_94], %255 {strides = array<i32>} : memref<1x16x128xf32, #tpu.memory_space<vmem>>, vector<1x16x128xf32>,
    return
  }
  func.func @transform_0(%arg0: i32) -> (i32, i32, i32) {
    %c0_i32 = arith.constant 0 : i32
    %c0_i32_0 = arith.constant 0 : i32
    %c0_i32_1 = arith.constant 0 : i32
    return %arg0, %c0_i32, %c0_i32_0 : i32, i32, i32
  }
  func.func @transform_1(%arg0: i32) -> (i32, i32, i32) {
    %c0_i32 = arith.constant 0 : i32
    %c0_i32_0 = arith.constant 0 : i32
    %c0_i32_1 = arith.constant 0 : i32
    return %arg0, %c0_i32, %c0_i32_0 : i32, i32, i32
  }
  func.func @transform_2(%arg0: i32) -> (i32, i32) {
    %c0_i32 = arith.constant 0 : i32
    %c0_i32_0 = arith.constant 0 : i32
    %c0_i32_1 = arith.constant 0 : i32
    return %c0_i32, %c0_i32_0 : i32, i32
  }
  func.func @transform_3(%arg0: i32) -> (i32, i32) {
    %c0_i32 = arith.constant 0 : i32
    %c0_i32_0 = arith.constant 0 : i32
    %c0_i32_1 = arith.constant 0 : i32
    return %c0_i32, %c0_i32_0 : i32, i32
  }
  func.func @transform_4(%arg0: i32) -> (i32, i32) {
    %c0_i32 = arith.constant 0 : i32
    %c0_i32_0 = arith.constant 0 : i32
    %c0_i32_1 = arith.constant 0 : i32
    return %c0_i32, %c0_i32_0 : i32, i32
  }
  func.func @transform_5(%arg0: i32) -> (i32, i32) {
    %c0_i32 = arith.constant 0 : i32
    %c0_i32_0 = arith.constant 0 : i32
    %c0_i32_1 = arith.constant 0 : i32
    return %c0_i32, %c0_i32_0 : i32, i32
  }
  func.func @transform_6(%arg0: i32) -> (i32, i32) {
    %c0_i32 = arith.constant 0 : i32
    %c0_i32_0 = arith.constant 0 : i32
    %c0_i32_1 = arith.constant 0 : i32
    return %c0_i32, %c0_i32_0 : i32, i32
  }
  func.func @transform_7(%arg0: i32) -> (i32, i32) {
    %c0_i32 = arith.constant 0 : i32
    %c0_i32_0 = arith.constant 0 : i32
    %c0_i32_1 = arith.constant 0 : i32
    return %c0_i32, %c0_i32_0 : i32, i32
  }
  func.func @transform_8(%arg0: i32) -> (i32, i32) {
    %c0_i32 = arith.constant 0 : i32
    %c0_i32_0 = arith.constant 0 : i32
    %c0_i32_1 = arith.constant 0 : i32
    return %c0_i32, %c0_i32_0 : i32, i32
  }
  func.func @transform_9(%arg0: i32) -> (i32, i32) {
    %c0_i32 = arith.constant 0 : i32
    %c0_i32_0 = arith.constant 0 : i32
    %c0_i32_1 = arith.constant 0 : i32
    return %c0_i32, %c0_i32_0 : i32, i32
  }
  func.func @transform_10(%arg0: i32) -> (i32, i32) {
    %c0_i32 = arith.constant 0 : i32
    %c0_i32_0 = arith.constant 0 : i32
    %c0_i32_1 = arith.constant 0 : i32
    return %c0_i32, %c0_i32_0 : i32, i32
  }
  func.func @transform_11(%arg0: i32) -> (i32, i32) {
    %c0_i32 = arith.constant 0 : i32
    %c0_i32_0 = arith.constant 0 : i32
    %c0_i32_1 = arith.constant 0 : i32
    return %c0_i32, %c0_i32_0 : i32, i32
  }
  func.func @transform_12(%arg0: i32) -> (i32, i32) {
    %c0_i32 = arith.constant 0 : i32
    %c0_i32_0 = arith.constant 0 : i32
    %c0_i32_1 = arith.constant 0 : i32
    return %c0_i32, %c0_i32_0 : i32, i32
  }
  func.func @transform_13(%arg0: i32) -> (i32, i32) {
    %c0_i32 = arith.constant 0 : i32
    %c0_i32_0 = arith.constant 0 : i32
    %c0_i32_1 = arith.constant 0 : i32
    return %c0_i32, %c0_i32_0 : i32, i32
  }
  func.func @transform_14(%arg0: i32) -> (i32, i32) {
    %c0_i32 = arith.constant 0 : i32
    %c0_i32_0 = arith.constant 0 : i32
    %c0_i32_1 = arith.constant 0 : i32
    return %c0_i32, %c0_i32_0 : i32, i32
  }
  func.func @transform_15(%arg0: i32) -> (i32, i32) {
    %c0_i32 = arith.constant 0 : i32
    %c0_i32_0 = arith.constant 0 : i32
    %c0_i32_1 = arith.constant 0 : i32
    return %c0_i32, %c0_i32_0 : i32, i32
  }
  func.func @transform_16(%arg0: i32) -> (i32, i32) {
    %c0_i32 = arith.constant 0 : i32
    %c0_i32_0 = arith.constant 0 : i32
    %c0_i32_1 = arith.constant 0 : i32
    return %c0_i32, %c0_i32_0 : i32, i32
  }
  func.func @transform_17(%arg0: i32) -> (i32, i32) {
    %c0_i32 = arith.constant 0 : i32
    %c0_i32_0 = arith.constant 0 : i32
    %c0_i32_1 = arith.constant 0 : i32
    return %c0_i32, %c0_i32_0 : i32, i32
  }
  func.func @transform_18(%arg0: i32) -> (i32, i32) {
    %c0_i32 = arith.constant 0 : i32
    %c0_i32_0 = arith.constant 0 : i32
    %c0_i32_1 = arith.constant 0 : i32
    return %c0_i32, %c0_i32_0 : i32, i32
  }
  func.func @transform_19(%arg0: i32) -> (i32, i32) {
    %c0_i32 = arith.constant 0 : i32
    %c0_i32_0 = arith.constant 0 : i32
    %c0_i32_1 = arith.constant 0 : i32
    return %c0_i32, %c0_i32_0 : i32, i32
  }
  func.func @transform_20(%arg0: i32) -> (i32, i32) {
    %c0_i32 = arith.constant 0 : i32
    %c0_i32_0 = arith.constant 0 : i32
    %c0_i32_1 = arith.constant 0 : i32
    return %c0_i32, %c0_i32_0 : i32, i32
  }
  func.func @transform_21(%arg0: i32) -> (i32, i32) {
    %c0_i32 = arith.constant 0 : i32
    %c0_i32_0 = arith.constant 0 : i32
    %c0_i32_1 = arith.constant 0 : i32
    return %c0_i32, %c0_i32_0 : i32, i32
  }
  func.func @transform_22(%arg0: i32) -> (i32, i32) {
    %c0_i32 = arith.constant 0 : i32
    %c0_i32_0 = arith.constant 0 : i32
    %c0_i32_1 = arith.constant 0 : i32
    return %c0_i32, %c0_i32_0 : i32, i32
  }
  func.func @transform_23(%arg0: i32) -> (i32, i32) {
    %c0_i32 = arith.constant 0 : i32
    %c0_i32_0 = arith.constant 0 : i32
    %c0_i32_1 = arith.constant 0 : i32
    return %c0_i32, %c0_i32_0 : i32, i32
  }
  func.func @transform_24(%arg0: i32) -> (i32, i32, i32) {
    %c0_i32 = arith.constant 0 : i32
    %c0_i32_0 = arith.constant 0 : i32
    %c0_i32_1 = arith.constant 0 : i32
    return %arg0, %c0_i32, %c0_i32_0 : i32, i32, i32
  }
}

</mosaic_0001>

<bundles_post_ra>
// kernel: tpu_custom_call.1
= control target key start
LH: loop header
LB: loop body
LE: loop exit
PB: predicated region body
PF: predicated region fallthrough
CT: control target
= control target key end

     0   :  { %s3988_s0 = inlined_call_operand.hbm [shape: f32[1,16,32], index: 0, kind: input, shape index: {}]   ;;  %s3989_s1 = inlined_call_operand.hbm [shape: f32[1,16,16], index: 1, kind: input, shape index: {}]   ;;  %s3990_s2 = inlined_call_operand.vmem [shape: f32[32,256], index: 2, kind: input, shape index: {}]   ;;  %s3991_s3 = inlined_call_operand.vmem [shape: f32[64,256], index: 3, kind: input, shape index: {}]   ;;  %s3992_s4 = inlined_call_operand.hbm [shape: f32[1,256], index: 4, kind: input, shape index: {}]   ;;  %s3993_s5 = inlined_call_operand.vmem [shape: f32[64,32], index: 5, kind: input, shape index: {}]   ;;  %s3994_s6 = inlined_call_operand.hbm [shape: f32[1,32], index: 6, kind: input, shape index: {}]   ;;  %s3995_s7 = inlined_call_operand.hbm [shape: f32[32,32], index: 7, kind: input, shape index: {}]   ;;  %s3996_s8 = inlined_call_operand.hbm [shape: f32[1,32], index: 8, kind: input, shape index: {}]   ;;  %s3997_s9 = inlined_call_operand.vmem [shape: f32[64,32], index: 9, kind: input, shape index: {}]   ;;  %s3998_s10 = inlined_call_operand.hbm [shape: f32[1,32], index: 10, kind: input, shape index: {}]   ;;  %s3999_s11 = inlined_call_operand.hbm [shape: f32[32,32], index: 11, kind: input, shape index: {}]   ;;  %s4000_s12 = inlined_call_operand.hbm [shape: f32[1,32], index: 12, kind: input, shape index: {}]   ;;  %s4001_s13 = inlined_call_operand.vmem [shape: f32[64,32], index: 13, kind: input, shape index: {}]   ;;  %s4002_s14 = inlined_call_operand.hbm [shape: f32[1,32], index: 14, kind: input, shape index: {}]   ;;  %s4003_s15 = inlined_call_operand.hbm [shape: f32[32,32], index: 15, kind: input, shape index: {}]   ;;  %s4004_s16 = inlined_call_operand.hbm [shape: f32[1,32], index: 16, kind: input, shape index: {}]   ;;  %s4005_s17 = inlined_call_operand.hbm [shape: f32[32,32], index: 17, kind: input, shape index: {}]   ;;  %s4006_s18 = inlined_call_operand.hbm [shape: f32[1,32], index: 18, kind: input, shape index: {}]   ;;  %s4007_s19 = inlined_call_operand.vmem [shape: f32[32,32], index: 19, kind: input, shape index: {}]   ;;  %s4008_s20 = inlined_call_operand.vmem [shape: f32[1,32], index: 20, kind: input, shape index: {}]   ;;  %s4009_s21 = inlined_call_operand.vmem [shape: f32[64,128], index: 21, kind: input, shape index: {}]   ;;  %s4010_s22 = inlined_call_operand.hbm [shape: f32[32,128], index: 22, kind: input, shape index: {}]   ;;  %s4011_s23 = inlined_call_operand.vmem [shape: f32[1,128], index: 23, kind: input, shape index: {}]   ;;  %s4012_s24 = inlined_call_operand.hbm [shape: f32[1,16,128], index: 24, kind: output, shape index: {}]  }
   0x1   :  { %4016 = sst [smem:[#allocation36_spill]] %s3988_s0 }
   0x2   :  { %4017 = sst [smem:[#allocation37_spill]] %s3989_s1 }
   0x3   :  { %4018 = sst [smem:[#allocation38_spill]] %s3990_s2 }
   0x4   :  { %4019 = sst [smem:[#allocation39_spill]] %s3991_s3 }
   0x5   :  { %4020 = sst [smem:[#allocation40_spill]] %s3992_s4 }
   0x6   :  { %4021 = sst [smem:[#allocation41_spill]] %s3993_s5 }
   0x7   :  { %4022 = sst [smem:[#allocation42_spill]] %s3994_s6 }
   0x8   :  { %4023 = sst [smem:[#allocation43_spill]] %s3995_s7 }
   0x9   :  { %4024 = sst [smem:[#allocation44_spill]] %s3996_s8 }
   0xa   :  { %4025 = sst [smem:[#allocation45_spill]] %s4012_s24 }
   0xb   :  { %29 = vsyncpa [#allocation3], 0 }
   0xc   :  { %30 = vsyncpa [#allocation6], 0 }
   0xd   :  { %31 = vsyncpa [#allocation9], 0 }
   0xe   :  { %32 = vsyncpa [#allocation12], 0 }
   0xf   :  { %33 = vsyncpa [#allocation15], 0 }
  0x10   :  { %34 = vsyncpa [#allocation18], 0 }
  0x11   :  { %35 = vsyncpa [#allocation21], 0 }
  0x12   :  { %36 = vsyncpa [#allocation24], 0 }
  0x13   :  { %37 = vsyncpa [#allocation4], 0  ;;  %s3240_s5 = smov [#allocation5]   ;;  %s3241_s27 = smov [#allocation8]  }
  0x14   :  { %s55_s26 = sshll.u32 %s3240_s5, 4  ;;  %s84_s28 = sshll.u32 %s3241_s27, 4  ;;  %s56_s26 = int_to_ptr.vmem [resolvable:$true] %s55_s26  ;;  %s85_s28 = int_to_ptr.vmem [resolvable:$true] %s84_s28 }
  0x15   :  { %s2910_s6 = scalar_lea.vmem %s56_s26, 256  ;;  %p2915_p1 = scmp.lt.s32.totalorder %s56_s26, %s56_s26 }
  0x16   :  { %p2911_p0 = scmp.ne.s32.totalorder %s56_s26, %s2910_s6  ;;  %p2916_p2 = scmp.lt.s32.totalorder %s2910_s6, %s2910_s6 }
  0x18   :  { %p2917_p3 = por %p2916_p2, %p2915_p1 }
  0x1a   :  { %p2918_p4 = pnand %p2917_p3, %p2911_p0 }
  0x1c   :  { %2921 = shalt.err (!%p2918_p4)
}
  0x1d   :  { %s3242_s2 = smov 128   ;;  %s3243_s29 = smov 8  }
  0x1e   :  { %s4026_s30 = sld [smem:[#allocation37_spill]]  ;;  %s2930_s3 = scalar_lea.vmem %s85_s28, 16 }
  0x1f   :  { %p2931_p5 = scmp.ne.s32.totalorder %s85_s28, %s2930_s3  ;;  %s2934_s25 = scalar_lea.vmem %s85_s28, 32 }
  0x20   :  { %p2935_p6 = scmp.lt.s32.totalorder %s85_s28, %s85_s28  ;;  %p2936_p7 = scmp.lt.s32.totalorder %s2934_s25, %s2930_s3 }
  0x22   :  { %p2937_p8 = por %p2936_p7, %p2935_p6 }
  0x24   :  { %61 = dma.hbm_to_vmem [thread:$0]  %s4026_s30, 256, %s56_s26, [#allocation6], %s3242_s2, %s3242_s2, %s3243_s29  }
  0x25   :  { %p2938_p9 = pnand %p2937_p8, %p2931_p5 }
  0x27   :  { %2941 = shalt.err (!%p2938_p9)
}
  0x28   :  { %s4027_s1 = sld [smem:[#allocation42_spill]]  ;;  %s3244_s5 = smov [#allocation11]  }
  0x29   :  { %s106_s27 = sshll.u32 %s3244_s5, 4  ;;  %s3245_s6 = smov [#allocation14]   ;;  %s107_s27 = int_to_ptr.vmem [resolvable:$true] %s106_s27 }
  0x2a   :  { %s127_s24 = sshll.u32 %s3245_s6, 4  ;;  %s2950_s0 = scalar_lea.vmem %s107_s27, 16  ;;  %s128_s24 = int_to_ptr.vmem [resolvable:$true] %s127_s24 }
  0x2b   :  { %p2951_p10 = scmp.ne.s32.totalorder %s107_s27, %s2950_s0  ;;  %s2954_s26 = scalar_lea.vmem %s107_s27, 32 }
  0x2c   :  { %p2955_p11 = scmp.lt.s32.totalorder %s107_s27, %s107_s27  ;;  %p2956_p12 = scmp.lt.s32.totalorder %s2954_s26, %s2950_s0 }
  0x2e   :  { %87 = dma.hbm_to_vmem [thread:$0]  %s4027_s1, 16, %s85_s28, [#allocation9]  }
  0x2f   :  { %p2957_p13 = por %p2956_p12, %p2955_p11 }
  0x31   :  { %p2958_p0 = pnand %p2957_p13, %p2951_p10 }
  0x33   :  { %2961 = shalt.err (!%p2958_p0)
}
  0x34   :  { %s4028_s3 = sld [smem:[#allocation44_spill]]  ;;  %s2970_s25 = scalar_lea.vmem %s128_s24, 512 }
  0x35   :  { %p2971_p1 = scmp.ne.s32.totalorder %s128_s24, %s2970_s25  ;;  %p2975_p2 = scmp.lt.s32.totalorder %s128_s24, %s128_s24 }
  0x36   :  { %p2976_p3 = scmp.lt.s32.totalorder %s2970_s25, %s2970_s25 }
  0x38   :  { %p2977_p4 = por %p2976_p3, %p2975_p2 }
  0x3a   :  { %109 = dma.hbm_to_vmem [thread:$0]  %s4028_s3, 16, %s107_s27, [#allocation12]  }
  0x3b   :  { %p2978_p5 = pnand %p2977_p4, %p2971_p1 }
  0x3d   :  { %2981 = shalt.err (!%p2978_p5)
}
  0x3e   :  { %133 = dma.hbm_to_vmem [thread:$0]  %s3999_s11, 512, %s128_s24, [#allocation15], %s3242_s2, %s3242_s2, %s3243_s29  }
  0x3f   :  { %s3246_s4 = smov [#allocation17]   ;;  %s3247_s5 = smov [#allocation20]  }
  0x40   :  { %s152_s1 = sshll.u32 %s3246_s4, 4  ;;  %s174_s6 = sshll.u32 %s3247_s5, 4  ;;  %s153_s1 = int_to_ptr.vmem [resolvable:$true] %s152_s1  ;;  %s175_s6 = int_to_ptr.vmem [resolvable:$true] %s174_s6 }
  0x41   :  { %s2990_s27 = scalar_lea.vmem %s153_s1, 16  ;;  %s2994_s0 = scalar_lea.vmem %s153_s1, 32 }
  0x42   :  { %p2991_p6 = scmp.ne.s32.totalorder %s153_s1, %s2990_s27  ;;  %p2995_p7 = scmp.lt.s32.totalorder %s153_s1, %s153_s1 }
  0x43   :  { %p2996_p8 = scmp.lt.s32.totalorder %s2994_s0, %s2990_s27 }
  0x45   :  { %p2997_p9 = por %p2996_p8, %p2995_p7 }
  0x47   :  { %p2998_p10 = pnand %p2997_p9, %p2991_p6 }
  0x49   :  { %3001 = shalt.err (!%p2998_p10)
}
  0x4a   :  { %155 = dma.hbm_to_vmem [thread:$0]  %s4002_s14, 16, %s153_s1, [#allocation18]  }
  0x4b   :  { %s3010_s30 = scalar_lea.vmem %s175_s6, 16  ;;  %s3014_s11 = scalar_lea.vmem %s175_s6, 32 }
  0x4c   :  { %p3011_p11 = scmp.ne.s32.totalorder %s175_s6, %s3010_s30  ;;  %p3015_p12 = scmp.lt.s32.totalorder %s175_s6, %s175_s6 }
  0x4d   :  { %p3016_p13 = scmp.lt.s32.totalorder %s3014_s11, %s3010_s30 }
  0x4f   :  { %p3017_p0 = por %p3016_p13, %p3015_p12 }
  0x51   :  { %p3018_p1 = pnand %p3017_p0, %p3011_p11 }
  0x53   :  { %3021 = shalt.err (!%p3018_p1)
}
  0x54   :  { %177 = dma.hbm_to_vmem [thread:$0]  %s4004_s16, 16, %s175_s6, [#allocation21]  }
  0x55   :  { %s3248_s25 = smov [#allocation23]   ;;  %s3249_s8 = smov [#allocation2]  }
  0x56   :  { %s196_s28 = sshll.u32 %s3248_s25, 4  ;;  %s43_s4 = sshll.u32 %s3249_s8, 4  ;;  %s197_s28 = int_to_ptr.vmem [resolvable:$true] %s196_s28  ;;  %s44_s4 = int_to_ptr.vmem [resolvable:$true] %s43_s4 }
  0x57   :  { %s3030_s5 = scalar_lea.vmem %s197_s28, 16  ;;  %s3034_s14 = scalar_lea.vmem %s197_s28, 32 }
  0x58   :  { %p3031_p2 = scmp.ne.s32.totalorder %s197_s28, %s3030_s5  ;;  %p3035_p3 = scmp.lt.s32.totalorder %s197_s28, %s197_s28 }
  0x59   :  { %p3036_p4 = scmp.lt.s32.totalorder %s3034_s14, %s3030_s5 }
  0x5b   :  { %p3037_p5 = por %p3036_p4, %p3035_p3 }
  0x5d   :  { %p3038_p6 = pnand %p3037_p5, %p3031_p2 }
  0x5f   :  { %3041 = shalt.err (!%p3038_p6)
}
  0x60   :  { %199 = dma.hbm_to_vmem [thread:$0]  %s4006_s18, 16, %s197_s28, [#allocation24]  }
  0x61   :  { %s3050_s0 = scalar_lea.vmem %s44_s4, 256  ;;  %p3055_p8 = scmp.lt.s32.totalorder %s44_s4, %s44_s4 }
  0x62   :  { %p3051_p7 = scmp.ne.s32.totalorder %s44_s4, %s3050_s0  ;;  %p3056_p9 = scmp.lt.s32.totalorder %s3050_s0, %s3050_s0 }
  0x64   :  { %p3057_p10 = por %p3056_p9, %p3055_p8 }
  0x66   :  { %p3058_p11 = pnand %p3057_p10, %p3051_p7 }
  0x68   :  { %3061 = shalt.err (!%p3058_p11)
}
  0x69   :  { %s4029_s26 = sld [smem:[#allocation36_spill]]  ;;  %s3250_s7 = smov [#allocation7]  }
  0x6a   :  { %s72_s30 = sshll.u32 %s3250_s7, 4  ;;  %s3251_s11 = smov [#allocation10]   ;;  %s73_s30 = int_to_ptr.vmem [resolvable:$true] %s72_s30 }
  0x6b   :  { %s93_s24 = sshll.u32 %s3251_s11, 4  ;;  %s3070_s18 = scalar_lea.vmem %s73_s30, 32  ;;  %s94_s24 = int_to_ptr.vmem [resolvable:$true] %s93_s24 }
  0x6c   :  { %p3071_p12 = scmp.ne.s32.totalorder %s73_s30, %s3070_s18  ;;  %p3075_p13 = scmp.lt.s32.totalorder %s73_s30, %s73_s30 }
  0x6d   :  { %p3076_p0 = scmp.lt.s32.totalorder %s3070_s18, %s3070_s18 }
  0x6f   :  { %49 = dma.hbm_to_vmem [thread:$0]  %s4029_s26, 256, %s44_s4, [#allocation3], %s3242_s2, %s3242_s2, %s3243_s29  }
  0x70   :  { %p3077_p1 = por %p3076_p0, %p3075_p13 }
  0x72   :  { %p3078_p2 = pnand %p3077_p1, %p3071_p12 }
  0x74   :  { %3081 = shalt.err (!%p3078_p2)
}
  0x75   :  { %s4030_s28 = sld [smem:[#allocation40_spill]]  ;;  %s3090_s8 = scalar_lea.vmem %s94_s24, 512 }
  0x76   :  { %p3091_p3 = scmp.ne.s32.totalorder %s94_s24, %s3090_s8  ;;  %p3095_p4 = scmp.lt.s32.totalorder %s94_s24, %s94_s24 }
  0x77   :  { %p3096_p5 = scmp.lt.s32.totalorder %s3090_s8, %s3090_s8 }
  0x79   :  { %p3097_p6 = por %p3096_p5, %p3095_p4 }
  0x7b   :  { %75 = dma.hbm_to_vmem [thread:$0]  %s4030_s28, 32, %s73_s30, [#allocation6]  }
  0x7c   :  { %p3098_p7 = pnand %p3097_p6, %p3091_p3 }
  0x7e   :  { %3101 = shalt.err (!%p3098_p7)
}
  0x7f   :  { %s4031_s14 = sld [smem:[#allocation43_spill]]  ;;  %s3252_s1 = smov [#allocation13]  }
  0x80   :  { %s118_s27 = sshll.u32 %s3252_s1, 4  ;;  %s3253_s0 = smov [#allocation16]   ;;  %s119_s27 = int_to_ptr.vmem [resolvable:$true] %s118_s27 }
  0x81   :  { %s140_s16 = sshll.u32 %s3253_s0, 4  ;;  %s3110_s6 = scalar_lea.vmem %s119_s27, 16  ;;  %s141_s16 = int_to_ptr.vmem [resolvable:$true] %s140_s16 }
  0x82   :  { %p3111_p8 = scmp.ne.s32.totalorder %s119_s27, %s3110_s6  ;;  %s3114_s26 = scalar_lea.vmem %s119_s27, 32 }
  0x83   :  { %p3115_p9 = scmp.lt.s32.totalorder %s119_s27, %s119_s27  ;;  %p3116_p10 = scmp.lt.s32.totalorder %s3114_s26, %s3110_s6 }
  0x85   :  { %99 = dma.hbm_to_vmem [thread:$0]  %s4031_s14, 512, %s94_s24, [#allocation9], %s3242_s2, %s3242_s2, %s3243_s29  }
  0x86   :  { %p3117_p11 = por %p3116_p10, %p3115_p9 }
  0x88   :  { %p3118_p12 = pnand %p3117_p11, %p3111_p8 }
  0x8a   :  { %3121 = shalt.err (!%p3118_p12)
}
  0x8b   :  { %121 = dma.hbm_to_vmem [thread:$0]  %s3998_s10, 16, %s119_s27, [#allocation12]  }
  0x8c   :  { %s3130_s11 = scalar_lea.vmem %s141_s16, 16  ;;  %s3134_s24 = scalar_lea.vmem %s141_s16, 32 }
  0x8d   :  { %p3131_p13 = scmp.ne.s32.totalorder %s141_s16, %s3130_s11  ;;  %p3135_p0 = scmp.lt.s32.totalorder %s141_s16, %s141_s16 }
  0x8e   :  { %p3136_p1 = scmp.lt.s32.totalorder %s3134_s24, %s3130_s11 }
  0x90   :  { %p3137_p2 = por %p3136_p1, %p3135_p0 }
  0x92   :  { %p3138_p3 = pnand %p3137_p2, %p3131_p13 }
  0x94   :  { %3141 = shalt.err (!%p3138_p3)
}
  0x95   :  { %143 = dma.hbm_to_vmem [thread:$0]  %s4000_s12, 16, %s141_s16, [#allocation15]  }
  0x96   :  { %s3254_s25 = smov [#allocation19]   ;;  %s3255_s8 = smov [#allocation22]  }
  0x97   :  { %s161_s28 = sshll.u32 %s3254_s25, 4  ;;  %s183_s4 = sshll.u32 %s3255_s8, 4  ;;  %s162_s28 = int_to_ptr.vmem [resolvable:$true] %s161_s28  ;;  %s184_s4 = int_to_ptr.vmem [resolvable:$true] %s183_s4 }
  0x98   :  { %s3150_s5 = scalar_lea.vmem %s162_s28, 512  ;;  %p3155_p5 = scmp.lt.s32.totalorder %s162_s28, %s162_s28 }
  0x99   :  { %p3151_p4 = scmp.ne.s32.totalorder %s162_s28, %s3150_s5  ;;  %p3156_p6 = scmp.lt.s32.totalorder %s3150_s5, %s3150_s5 }
  0x9b   :  { %p3157_p7 = por %p3156_p6, %p3155_p5 }
  0x9d   :  { %p3158_p8 = pnand %p3157_p7, %p3151_p4 }
  0x9f   :  { %3161 = shalt.err (!%p3158_p8)
}
  0xa0   :  { %167 = dma.hbm_to_vmem [thread:$0]  %s4003_s15, 512, %s162_s28, [#allocation18], %s3242_s2, %s3242_s2, %s3243_s29  }
  0xa1   :  { %s3170_s12 = scalar_lea.vmem %s184_s4, 512  ;;  %p3175_p10 = scmp.lt.s32.totalorder %s184_s4, %s184_s4 }
  0xa2   :  { %p3171_p9 = scmp.ne.s32.totalorder %s184_s4, %s3170_s12  ;;  %p3176_p11 = scmp.lt.s32.totalorder %s3170_s12, %s3170_s12 }
  0xa4   :  { %p3177_p12 = por %p3176_p11, %p3175_p10 }
  0xa6   :  { %p3178_p13 = pnand %p3177_p12, %p3171_p9 }
  0xa8   :  { %3181 = shalt.err (!%p3178_p13)
}
  0xa9   :  { %189 = dma.hbm_to_vmem [thread:$0]  %s4005_s17, 512, %s184_s4, [#allocation21], %s3242_s2, %s3242_s2, %s3243_s29  }
  0xaa   :  { %s3256_s0 = smov [#allocation25]  }
  0xab   :  { %s211_s16 = sshll.u32 %s3256_s0, 4  ;;  %s212_s16 = int_to_ptr.vmem [resolvable:$true] %s211_s16 }
  0xac   :  { %s3190_s6 = scalar_lea.vmem %s212_s16, 512  ;;  %p3195_p1 = scmp.lt.s32.totalorder %s212_s16, %s212_s16 }
  0xad   :  { %p3191_p0 = scmp.ne.s32.totalorder %s212_s16, %s3190_s6  ;;  %p3196_p2 = scmp.lt.s32.totalorder %s3190_s6, %s3190_s6 }
  0xaf   :  { %p3197_p3 = por %p3196_p2, %p3195_p1 }
  0xb1   :  { %p3198_p4 = pnand %p3197_p3, %p3191_p0 }
  0xb3   :  { %3201 = shalt.err (!%p3198_p4)
}
  0xb4   :  { %217 = dma.hbm_to_vmem [thread:$0]  %s4010_s22, 512, %s212_s16, [#allocation24], %s3242_s2, %s3242_s2, %s3243_s29  }
  0xb5   :  { %3222 = dma.done.wait [#allocation3], 256  }
  0xb6   :  { %3223 = vsyncadd [#allocation3], 4294967040 }
  0xb7   :  { %3224 = dma.done.wait [#allocation6], 288  }
  0xb8   :  { %3225 = vsyncadd [#allocation6], 4294967008 }
  0xb9   :  { %3226 = dma.done.wait [#allocation9], 528  }
  0xba   :  { %3227 = vsyncadd [#allocation9], 4294966768 }
  0xbb   :  { %3228 = dma.done.wait [#allocation12], 32  }
  0xbc   :  { %3229 = vsyncadd [#allocation12], 4294967264 }
  0xbd   :  { %3230 = dma.done.wait [#allocation15], 528  }
  0xbe   :  { %3231 = vsyncadd [#allocation15], 4294966768 }
  0xbf   :  { %3232 = dma.done.wait [#allocation18], 528  }
  0xc0   :  { %3233 = vsyncadd [#allocation18], 4294966768 }
  0xc1   :  { %3234 = dma.done.wait [#allocation21], 528  }
  0xc2   :  { %3235 = vsyncadd [#allocation21], 4294966768 }
  0xc3   :  { %3236 = dma.done.wait [#allocation24], 528  }
  0xc4   :  { %3237 = vsyncadd [#allocation24], 4294966768  ;;  %v3257_v0 = vmov 0.0   ;;  %s4032_s7 = sld [smem:[#allocation39_spill]]  ;;  %v265_v19 = vld [vmem:[#allocation2] sm:$0xff]  ;;  %vm287_vm0 = vcmask 261120   ;;  %v277_v26 = vlaneseq }
  0xc5   :  { %358 = vmatprep.mubr.f32.mxu0 %v3257_v0  ;;  %455 = vmatprep.mubr.f32.mxu1 %v3257_v0  ;;  %s4033_s4 = sld [smem:[#allocation38_spill]]  ;;  %v275_v29 = vld [vmem:[#allocation7] sm:$0x3]  ;;  %v266_v48 = vld [vmem:[#allocation2 + $0x8] sm:$0xff]  ;;  %vm387_vm1 = vcmask 523264   ;;  %vm1298_vm2 = vcmask 1041408  }
  0xc6   :  { %v3612_v27 = vshrl.u32 %v277_v26, 7  ;;  %vm1300_vm3 = vcmask 1043456   ;;  %vm1302_vm4 = vcmask 1045504   ;;  %s4034_s25 = sld [smem:[#allocation41_spill]]  ;;  %vm1783_vm10 = vcmask 130048  }
  0xc8   :  { %v283_v28 = vsub.s32 1, %v3612_v27  ;;  %v279_v38 = vsub.s32 0, %v3612_v27 }
  0xca   :  { %v3456_v1 = vld [vmem:[%s4032_s7 + $0x78] sm:$0xff]  ;;  %v3461_v2 = vld [vmem:[%s4032_s7 + $0x70] sm:$0xff]  ;;  %v3466_v3 = vld [vmem:[%s4032_s7 + $0x68] sm:$0xff]  ;;  %v3615_v31 = vrot.slane %v275_v29, %v283_v28  ;;  %v3623_v39 = vrot.slane %v275_v29, %v279_v38 }
  0xcb   :  { %407 = vmatprep.subr.mxu1 %v3456_v1  ;;  %v3472_v4 = vld [vmem:[%s4032_s7 + $0x60] sm:$0xff]  ;;  %v274_v5 = vld [vmem:[%s4033_s4 + $0x38] sm:$0xff]  ;;  %v273_v7 = vld [vmem:[%s4033_s4 + $0x30] sm:$0xff] }
  0xcc   :  { %408 = vmatpush1.msra.mxu1 %v3461_v2  ;;  %318 = vmatprep.subr.mxu0 %v274_v5  ;;  %v3481_v6 = vld [vmem:[%s4032_s7 + $0x58] sm:$0xff]  ;;  %v272_v8 = vld [vmem:[%s4033_s4 + $0x28] sm:$0xff]  ;;  %v3493_v9 = vld [vmem:[%s4032_s7 + $0x50] sm:$0xff] }
  0xcd   :  { %409 = vmatprep.subr.mxu1 %v3466_v3  ;;  %319 = vmatpush1.msra.mxu0 %v273_v7  ;;  %v271_v10 = vld [vmem:[%s4033_s4 + $0x20] sm:$0xff]  ;;  %v3502_v11 = vld [vmem:[%s4032_s7 + $0x48] sm:$0xff]  ;;  %v270_v12 = vld [vmem:[%s4033_s4 + $0x18] sm:$0xff] }
  0xce   :  { %410 = vmatpush1.msra.mxu1 %v3472_v4  ;;  %320 = vmatprep.subr.mxu0 %v272_v8  ;;  %v269_v13 = vld [vmem:[%s4033_s4 + $0x10] sm:$0xff]  ;;  %v3514_v14 = vld [vmem:[%s4032_s7 + $0x40] sm:$0xff]  ;;  %v268_v15 = vld [vmem:[%s4033_s4 + $0x8] sm:$0xff] }
  0xcf   :  { %411 = vmatprep.subr.mxu1 %v3481_v6  ;;  %321 = vmatpush1.msra.mxu0 %v271_v10  ;;  %v3523_v16 = vld [vmem:[%s4032_s7 + $0x38] sm:$0xff]  ;;  %v267_v17 = vld [vmem:[%s4033_s4] sm:$0xff]  ;;  %v3532_v18 = vld [vmem:[%s4032_s7 + $0x30] sm:$0xff] }
  0xd0   :  { %412 = vmatpush1.msra.mxu1 %v3493_v9  ;;  %322 = vmatprep.subr.mxu0 %v270_v12  ;;  %v3538_v20 = vld [vmem:[%s4032_s7 + $0x28] sm:$0xff]  ;;  %v3544_v21 = vld [vmem:[%s4032_s7 + $0x20] sm:$0xff]  ;;  %v3551_v22 = vld [vmem:[%s4032_s7 + $0x18] sm:$0xff] }
  0xd1   :  { %413 = vmatprep.subr.mxu1 %v3502_v11  ;;  %323 = vmatpush1.msra.mxu0 %v269_v13  ;;  %v3557_v23 = vld [vmem:[%s4032_s7 + $0x10] sm:$0xff]  ;;  %v3564_v24 = vld [vmem:[%s4032_s7 + $0x8] sm:$0xff]  ;;  %v3571_v25 = vld [vmem:[%s4032_s7] sm:$0xff]  ;;  %s3258_s7 = smov 64  }
  0xd2   :  { %414 = vmatpush1.msra.mxu1 %v3514_v14  ;;  %324 = vmatprep.subr.mxu0 %v268_v15 }
  0xd3   :  { %415 = vmatprep.subr.mxu1 %v3523_v16  ;;  %325 = vmatpush1.msra.mxu0 %v267_v17 }
  0xd4   :  { %416 = vmatpush1.msra.mxu1 %v3532_v18  ;;  %2478 = vmatmul.mubr.msk.f32.vlgmr.msra.gmra.mxu0 %vm287_vm0, %v265_v19 }
  0xd5   :  { %417 = vmatprep.subr.mxu1 %v3538_v20  ;;  %513 = vmatprep.subr.mxu0 %v3456_v1 }
  0xd6   :  { %418 = vmatpush1.msra.mxu1 %v3544_v21  ;;  %514 = vmatpush1.msra.mxu0 %v3461_v2 }
  0xd7   :  { %419 = vmatprep.subr.mxu1 %v3551_v22  ;;  %515 = vmatprep.subr.mxu0 %v3466_v3 }
  0xd8   :  { %420 = vmatpush1.msra.mxu1 %v3557_v23  ;;  %516 = vmatpush1.msra.mxu0 %v3472_v4 }
  0xd9   :  { %421 = vmatprep.subr.mxu1 %v3564_v24  ;;  %517 = vmatprep.subr.mxu0 %v3481_v6 }
  0xda   :  { %422 = vmatpush1.msra.mxu1 %v3571_v25  ;;  %518 = vmatpush1.msra.mxu0 %v3493_v9 }
  0xdb   :  { %456 = vmatmul.mubr.f32.vlgmr.msra.gmra.mxu1 %v3257_v0  ;;  %519 = vmatprep.subr.mxu0 %v3502_v11 }
  0xdc   :  { %520 = vmatpush1.msra.mxu0 %v3514_v14  ;;  %364 = vmatprep.mubr.f32.mxu0 %v3257_v0 }
  0xdd   :  { %521 = vmatprep.subr.mxu0 %v3523_v16  ;;  %629 = vmatprep.subr.mxu1 %v3456_v1 }
  0xde   :  { %522 = vmatpush1.msra.mxu0 %v3532_v18  ;;  %630 = vmatpush1.msra.mxu1 %v3461_v2 }
  0xdf   :  { %523 = vmatprep.subr.mxu0 %v3538_v20  ;;  %631 = vmatprep.subr.mxu1 %v3466_v3 }
  0xe0   :  { %524 = vmatpush1.msra.mxu0 %v3544_v21  ;;  %632 = vmatpush1.msra.mxu1 %v3472_v4 }
  0xe1   :  { %525 = vmatprep.subr.mxu0 %v3551_v22  ;;  %633 = vmatprep.subr.mxu1 %v3481_v6 }
  0xe2   :  { %526 = vmatpush1.msra.mxu0 %v3557_v23  ;;  %634 = vmatpush1.msra.mxu1 %v3493_v9 }
  0xe3   :  { %527 = vmatprep.subr.mxu0 %v3564_v24  ;;  %635 = vmatprep.subr.mxu1 %v3502_v11 }
  0xe4   :  { %528 = vmatpush1.msra.mxu0 %v3571_v25  ;;  %636 = vmatpush1.msra.mxu1 %v3514_v14 }
  0xe5   :  { %637 = vmatprep.subr.mxu1 %v3523_v16  ;;  %677 = vmatprep.mubr.f32.mxu1 %v3257_v0 }
  0xe6   :  { %638 = vmatpush1.msra.mxu1 %v3532_v18  ;;  %745 = vmatprep.subr.mxu0 %v3456_v1 }
  0xe7   :  { %639 = vmatprep.subr.mxu1 %v3538_v20  ;;  %2479 = vmatmul.mubr.msk.f32.gmra.mxu0 %vm287_vm0, %v266_v48 }
  0xe8   :  { %640 = vmatpush1.msra.mxu1 %v3544_v21  ;;  %561 = vmatprep.mubr.f32.mxu0 %v3257_v0 }
  0xe9   :  { %641 = vmatprep.subr.mxu1 %v3551_v22 }
  0xea   :  { %642 = vmatpush1.msra.mxu1 %v3557_v23 }
  0xeb   :  { %643 = vmatprep.subr.mxu1 %v3564_v24 }
  0xec   :  { %644 = vmatpush1.msra.mxu1 %v3571_v25 }
  0xed   :  { %861 = vmatprep.subr.mxu1 %v3456_v1 }
 0x194   :  { %v360_v30 = vpop.f32.mrf.mxu0 }
 0x195   :  { %v3626_v40 = vadd.f32 %v360_v30, %v3623_v39 }
 0x196   :  { %v362_v32 = vpop.f32.mrf.mxu0 }
 0x197   :  { %v3618_v34 = vadd.f32 %v362_v32, %v3615_v31 }
 0x19b   :  { %v457_v33 = vpop.f32.mrf.mxu1 }
 0x19c   :  { %v462_v41 = vadd.f32 %v457_v33, %v3626_v40 }
 0x19d   :  { %v459_v35 = vpop.f32.mrf.mxu1 }
 0x19e   :  { %v463_v36 = vadd.f32 %v459_v35, %v3618_v34  ;;  %v2480_v42 = vmul.f32 -1.442695, %v462_v41 }
 0x1a0   :  { %2798 = vtanh.f32 %v463_v36  ;;  %v2481_v53 = vmul.f32 -1.442695, %v463_v36 }
 0x1a1   :  { %2800 = vpow2.f32 %v2480_v42 }
 0x1a7   :  { %v3654_v59 = vpop.f32.mrf.mxu0 }
 0x1a9   :  { %v3656_v60 = vpop.f32.mrf.mxu0 }
 0x1ad   :  { %v2799_v37 = vpop.eup %2798 }
 0x1ae   :  { %479 = vrot.lane.b32.xlu0 %v2799_v37, %s3258_s7  ;;  %v2801_v43 = vpop.eup %2800 }
 0x1af   :  { %v470_v44 = vadd.f32 1.0, %v2801_v43 }
 0x1b1   :  { %2802 = vrcp.f32 %v470_v44 }
 0x1be   :  { %v2803_v45 = vpop.eup %2802 }
 0x1bf   :  { %v477_v49 = vmul.f32 0.0, %v2803_v45 }
 0x220   :  { %v480_v46 = vpop.permute.xlu0 %479 }
 0x221   :  { %v482_v47 = vmul.f32 %v2803_v45, %v480_v46 }
 0x223   :  { %484 = vrot.lane.b32.xlu0 %v482_v47, %s3258_s7 }
 0x295   :  { %v485_v50 = vpop.permute.xlu0 %484 }
 0x296   :  { %v487_v51 = vadd.f32 %v485_v50, %v477_v49 }
 0x298   :  { %2804 = vtanh.f32 %v487_v51  ;;  %v590_v29 = vrot.slane %v487_v51, 6 }
 0x299   :  { %2806 = vpow2.f32 %v2481_v53 }
 0x2a5   :  { %v2805_v52 = vpop.eup %2804 }
 0x2a6   :  { %490 = vrot.lane.b32.xlu1 %v2805_v52, %s3258_s7  ;;  %v2807_v54 = vpop.eup %2806 }
 0x2a7   :  { %v471_v55 = vadd.f32 1.0, %v2807_v54 }
 0x2a9   :  { %2808 = vrcp.f32 %v471_v55 }
 0x2b6   :  { %v2809_v56 = vpop.eup %2808 }
 0x318   :  { %v491_v57 = vpop.permute.xlu1 %490 }
 0x319   :  { %v3633_v58 = vmul.f32 %v2809_v56, %v491_v57 }
 0x31b   :  { %2482 = vmatmul.mubr.msk.f32.vlgmr.msra.gmra.mxu0 %vm387_vm1, %v3633_v58 }
 0x31c   :  { %746 = vmatpush1.msra.mxu0 %v3461_v2  ;;  %793 = vmatprep.mubr.f32.mxu0 %v3257_v0 }
 0x31d   :  { %747 = vmatprep.subr.mxu0 %v3466_v3 }
 0x31e   :  { %748 = vmatpush1.msra.mxu0 %v3472_v4 }
 0x31f   :  { %749 = vmatprep.subr.mxu0 %v3481_v6 }
 0x320   :  { %750 = vmatpush1.msra.mxu0 %v3493_v9 }
 0x321   :  { %751 = vmatprep.subr.mxu0 %v3502_v11 }
 0x322   :  { %752 = vmatpush1.msra.mxu0 %v3514_v14 }
 0x323   :  { %753 = vmatprep.subr.mxu0 %v3523_v16 }
 0x324   :  { %754 = vmatpush1.msra.mxu0 %v3532_v18 }
 0x325   :  { %755 = vmatprep.subr.mxu0 %v3538_v20 }
 0x326   :  { %756 = vmatpush1.msra.mxu0 %v3544_v21 }
 0x327   :  { %757 = vmatprep.subr.mxu0 %v3551_v22 }
 0x328   :  { %758 = vmatpush1.msra.mxu0 %v3557_v23 }
 0x329   :  { %759 = vmatprep.subr.mxu0 %v3564_v24 }
 0x32a   :  { %760 = vmatpush1.msra.mxu0 %v3571_v25 }
 0x32b   :  { %970 = vmatprep.subr.mxu0 %v3456_v1 }
 0x3db   :  { %v563_v61 = vpop.f32.mrf.mxu0 }
 0x3dc   :  { %v570_v8 = vrot.slane %v563_v61, 6 }
 0x3dd   :  { %v565_v62 = vpop.f32.mrf.mxu0 }
 0x3de   :  { %v571_v63 = vrot.slane %v565_v62, 6  ;;  %v574_v10 = vadd.f32 %v570_v8, %v3626_v40 }
 0x3e0   :  { %v575_v5 = vadd.f32 %v571_v63, %v3618_v34  ;;  %v2483_v12 = vmul.f32 -1.442695, %v574_v10 }
 0x3e2   :  { %2810 = vtanh.f32 %v575_v5  ;;  %v2484_v36 = vmul.f32 -1.442695, %v575_v5 }
 0x3e3   :  { %2812 = vpow2.f32 %v2483_v12 }
 0x3ef   :  { %v2811_v7 = vpop.eup %2810 }
 0x3f0   :  { %594 = vrot.lane.b32.xlu1 %v2811_v7, %s3258_s7  ;;  %v2813_v13 = vpop.eup %2812 }
 0x3f1   :  { %v582_v15 = vadd.f32 1.0, %v2813_v13 }
 0x3f3   :  { %2814 = vrcp.f32 %v582_v15 }
 0x400   :  { %v2815_v17 = vpop.eup %2814 }
 0x401   :  { %v592_v30 = vmul.f32 %v2815_v17, %v590_v29 }
 0x462   :  { %v595_v19 = vpop.permute.xlu1 %594 }
 0x463   :  { %v597_v28 = vmul.f32 %v2815_v17, %v595_v19 }
 0x465   :  { %599 = vrot.lane.b32.xlu0 %v597_v28, %s3258_s7 }
 0x4d7   :  { %v600_v32 = vpop.permute.xlu0 %599 }
 0x4d8   :  { %v602_v33 = vadd.f32 %v600_v32, %v592_v30 }
 0x4da   :  { %2816 = vtanh.f32 %v602_v33  ;;  %v706_v61 = vrot.slane %v602_v33, 6 }
 0x4db   :  { %2818 = vpow2.f32 %v2484_v36 }
 0x4e7   :  { %v2817_v35 = vpop.eup %2816 }
 0x4e8   :  { %605 = vrot.lane.b32.xlu1 %v2817_v35, %s3258_s7  ;;  %v2819_v37 = vpop.eup %2818 }
 0x4e9   :  { %v583_v38 = vadd.f32 1.0, %v2819_v37 }
 0x4eb   :  { %2820 = vrcp.f32 %v583_v38 }
 0x4f8   :  { %v2821_v41 = vpop.eup %2820 }
 0x55a   :  { %v606_v42 = vpop.permute.xlu1 %605 }
 0x55b   :  { %v608_v43 = vmul.f32 %v2821_v41, %v606_v42 }
 0x55d   :  { %v610_v44 = vrot.slane %v608_v43, 2  ;;  %v1299_v19 = vsel %vm1298_vm2, %v3633_v58, %v608_v43 }
 0x55f   :  { %2485 = vmatmul.mubr.msk.f32.vlgmr.msra.gmra.mxu1 %vm387_vm1, %v610_v44 }
 0x560   :  { %862 = vmatpush1.msra.mxu1 %v3461_v2  ;;  %909 = vmatprep.mubr.f32.mxu1 %v3257_v0 }
 0x561   :  { %863 = vmatprep.subr.mxu1 %v3466_v3 }
 0x562   :  { %864 = vmatpush1.msra.mxu1 %v3472_v4 }
 0x563   :  { %865 = vmatprep.subr.mxu1 %v3481_v6 }
 0x564   :  { %866 = vmatpush1.msra.mxu1 %v3493_v9 }
 0x565   :  { %867 = vmatprep.subr.mxu1 %v3502_v11 }
 0x566   :  { %868 = vmatpush1.msra.mxu1 %v3514_v14 }
 0x567   :  { %869 = vmatprep.subr.mxu1 %v3523_v16 }
 0x568   :  { %870 = vmatpush1.msra.mxu1 %v3532_v18 }
 0x569   :  { %871 = vmatprep.subr.mxu1 %v3538_v20 }
 0x56a   :  { %872 = vmatpush1.msra.mxu1 %v3544_v21 }
 0x56b   :  { %873 = vmatprep.subr.mxu1 %v3551_v22 }
 0x56c   :  { %874 = vmatpush1.msra.mxu1 %v3557_v23 }
 0x56d   :  { %875 = vmatprep.subr.mxu1 %v3564_v24 }
 0x56e   :  { %876 = vmatpush1.msra.mxu1 %v3571_v25 }
 0x56f   :  { %1086 = vmatprep.subr.mxu1 %v3456_v1 }
 0x61f   :  { %v679_v45 = vpop.f32.mrf.mxu1 }
 0x620   :  { %v686_v50 = vrot.slane %v679_v45, 4 }
 0x621   :  { %v681_v46 = vpop.f32.mrf.mxu1 }
 0x622   :  { %v687_v47 = vrot.slane %v681_v46, 4  ;;  %v690_v51 = vadd.f32 %v686_v50, %v3626_v40 }
 0x624   :  { %v691_v48 = vadd.f32 %v687_v47, %v3618_v34  ;;  %v2486_v52 = vmul.f32 -1.442695, %v690_v51 }
 0x626   :  { %2822 = vtanh.f32 %v691_v48  ;;  %v2487_v8 = vmul.f32 -1.442695, %v691_v48 }
 0x627   :  { %2824 = vpow2.f32 %v2486_v52 }
 0x633   :  { %v2823_v49 = vpop.eup %2822 }
 0x634   :  { %710 = vrot.lane.b32.xlu0 %v2823_v49, %s3258_s7  ;;  %v2825_v53 = vpop.eup %2824 }
 0x635   :  { %v698_v54 = vadd.f32 1.0, %v2825_v53 }
 0x637   :  { %2826 = vrcp.f32 %v698_v54 }
 0x644   :  { %v2827_v55 = vpop.eup %2826 }
 0x645   :  { %v708_v62 = vmul.f32 %v2827_v55, %v706_v61 }
 0x6a6   :  { %v711_v56 = vpop.permute.xlu0 %710 }
 0x6a7   :  { %v713_v57 = vmul.f32 %v2827_v55, %v711_v56 }
 0x6a9   :  { %715 = vrot.lane.b32.xlu1 %v713_v57, %s3258_s7  ;;  %v3734_v57 = vadd.f32 %v3656_v60, %v3615_v31 }
 0x71b   :  { %v716_v63 = vpop.permute.xlu1 %715 }
 0x71c   :  { %v718_v5 = vadd.f32 %v716_v63, %v708_v62 }
 0x71e   :  { %2828 = vtanh.f32 %v718_v5  ;;  %v822_v45 = vrot.slane %v718_v5, 6  ;;  %v3740_v5 = vadd.f32 %v3654_v59, %v3623_v39 }
 0x71f   :  { %2830 = vpow2.f32 %v2487_v8 }
 0x72b   :  { %v2829_v7 = vpop.eup %2828 }
 0x72c   :  { %721 = vrot.lane.b32.xlu0 %v2829_v7, %s3258_s7  ;;  %v2831_v10 = vpop.eup %2830 }
 0x72d   :  { %v699_v12 = vadd.f32 1.0, %v2831_v10 }
 0x72f   :  { %2832 = vrcp.f32 %v699_v12 }
 0x73c   :  { %v2833_v13 = vpop.eup %2832 }
 0x79e   :  { %v722_v15 = vpop.permute.xlu0 %721 }
 0x79f   :  { %v724_v17 = vmul.f32 %v2833_v13, %v722_v15 }
 0x7a1   :  { %v726_v28 = vrot.slane %v724_v17, 4  ;;  %v1301_v29 = vsel %vm1300_vm3, %v1299_v19, %v724_v17 }
 0x7a3   :  { %2488 = vmatmul.mubr.msk.f32.vlgmr.msra.gmra.mxu0 %vm387_vm1, %v726_v28 }
 0x7a4   :  { %971 = vmatpush1.msra.mxu0 %v3461_v2  ;;  %1018 = vmatprep.mubr.f32.mxu0 %v3257_v0 }
 0x7a5   :  { %972 = vmatprep.subr.mxu0 %v3466_v3 }
 0x7a6   :  { %973 = vmatpush1.msra.mxu0 %v3472_v4 }
 0x7a7   :  { %974 = vmatprep.subr.mxu0 %v3481_v6 }
 0x7a8   :  { %975 = vmatpush1.msra.mxu0 %v3493_v9 }
 0x7a9   :  { %976 = vmatprep.subr.mxu0 %v3502_v11 }
 0x7aa   :  { %977 = vmatpush1.msra.mxu0 %v3514_v14 }
 0x7ab   :  { %978 = vmatprep.subr.mxu0 %v3523_v16 }
 0x7ac   :  { %979 = vmatpush1.msra.mxu0 %v3532_v18 }
 0x7ad   :  { %980 = vmatprep.subr.mxu0 %v3538_v20 }
 0x7ae   :  { %981 = vmatpush1.msra.mxu0 %v3544_v21 }
 0x7af   :  { %982 = vmatprep.subr.mxu0 %v3551_v22 }
 0x7b0   :  { %983 = vmatpush1.msra.mxu0 %v3557_v23 }
 0x7b1   :  { %984 = vmatprep.subr.mxu0 %v3564_v24 }
 0x7b2   :  { %985 = vmatpush1.msra.mxu0 %v3571_v25 }
 0x7b3   :  { %1202 = vmatprep.subr.mxu0 %v3456_v1 }
 0x863   :  { %v795_v58 = vpop.f32.mrf.mxu0 }
 0x864   :  { %v802_v36 = vrot.slane %v795_v58, 2 }
 0x865   :  { %v797_v30 = vpop.f32.mrf.mxu0 }
 0x866   :  { %v803_v32 = vrot.slane %v797_v30, 2  ;;  %v806_v37 = vadd.f32 %v802_v36, %v3626_v40 }
 0x868   :  { %v807_v33 = vadd.f32 %v803_v32, %v3618_v34  ;;  %v2489_v38 = vmul.f32 -1.442695, %v806_v37 }
 0x86a   :  { %2834 = vtanh.f32 %v807_v33  ;;  %v2490_v49 = vmul.f32 -1.442695, %v807_v33 }
 0x86b   :  { %2836 = vpow2.f32 %v2489_v38 }
 0x877   :  { %v2835_v35 = vpop.eup %2834 }
 0x878   :  { %826 = vrot.lane.b32.xlu1 %v2835_v35, %s3258_s7  ;;  %v2837_v41 = vpop.eup %2836 }
 0x879   :  { %v814_v42 = vadd.f32 1.0, %v2837_v41 }
 0x87b   :  { %2838 = vrcp.f32 %v814_v42 }
 0x888   :  { %v2839_v43 = vpop.eup %2838 }
 0x889   :  { %v824_v46 = vmul.f32 %v2839_v43, %v822_v45 }
 0x8ea   :  { %v827_v44 = vpop.permute.xlu1 %826 }
 0x8eb   :  { %v829_v1 = vmul.f32 %v2839_v43, %v827_v44 }
 0x8ed   :  { %831 = vrot.lane.b32.xlu0 %v829_v1, %s3258_s7 }
 0x95f   :  { %v832_v34 = vpop.permute.xlu0 %831 }
 0x960   :  { %v834_v47 = vadd.f32 %v832_v34, %v824_v46 }
 0x962   :  { %2840 = vtanh.f32 %v834_v47  ;;  %v932_v15 = vrot.slane %v834_v47, 6 }
 0x963   :  { %2842 = vpow2.f32 %v2490_v49 }
 0x96f   :  { %v2841_v48 = vpop.eup %2840 }
 0x970   :  { %837 = vrot.lane.b32.xlu1 %v2841_v48, %s3258_s7  ;;  %v2843_v40 = vpop.eup %2842 }
 0x971   :  { %v815_v50 = vadd.f32 1.0, %v2843_v40 }
 0x973   :  { %2844 = vrcp.f32 %v815_v50 }
 0x980   :  { %v2845_v51 = vpop.eup %2844 }
 0x9e2   :  { %v838_v52 = vpop.permute.xlu1 %837 }
 0x9e3   :  { %v840_v53 = vmul.f32 %v2845_v51, %v838_v52 }
 0x9e5   :  { %v842_v54 = vrot.slane %v840_v53, 6  ;;  %v3713_v55 = vsel %vm1302_vm4, %v1301_v29, %v840_v53 }
 0x9e7   :  { %2491 = vmatmul.mubr.msk.f32.vlgmr.msra.gmra.mxu1 %vm387_vm1, %v842_v54 }
 0x9e8   :  { %1087 = vmatpush1.msra.mxu1 %v3461_v2  ;;  %1134 = vmatprep.mubr.f32.mxu1 %v3257_v0 }
 0x9e9   :  { %1088 = vmatprep.subr.mxu1 %v3466_v3 }
 0x9ea   :  { %1089 = vmatpush1.msra.mxu1 %v3472_v4 }
 0x9eb   :  { %1090 = vmatprep.subr.mxu1 %v3481_v6 }
 0x9ec   :  { %1091 = vmatpush1.msra.mxu1 %v3493_v9 }
 0x9ed   :  { %1092 = vmatprep.subr.mxu1 %v3502_v11 }
 0x9ee   :  { %1093 = vmatpush1.msra.mxu1 %v3514_v14 }
 0x9ef   :  { %1094 = vmatprep.subr.mxu1 %v3523_v16 }
 0x9f0   :  { %1095 = vmatpush1.msra.mxu1 %v3532_v18 }
 0x9f1   :  { %1096 = vmatprep.subr.mxu1 %v3538_v20 }
 0x9f2   :  { %1097 = vmatpush1.msra.mxu1 %v3544_v21 }
 0x9f3   :  { %1098 = vmatprep.subr.mxu1 %v3551_v22 }
 0x9f4   :  { %1099 = vmatpush1.msra.mxu1 %v3557_v23 }
 0x9f5   :  { %1100 = vmatprep.subr.mxu1 %v3564_v24 }
 0x9f6   :  { %1101 = vmatpush1.msra.mxu1 %v3571_v25 }
 0xaa7   :  { %v911_v56 = vpop.f32.mrf.mxu1 }
 0xaa8   :  { %v916_v7 = vadd.f32 %v911_v56, %v3740_v5 }
 0xaa9   :  { %v913_v61 = vpop.f32.mrf.mxu1 }
 0xaaa   :  { %v917_v62 = vadd.f32 %v913_v61, %v3734_v57  ;;  %v2492_v8 = vmul.f32 -1.442695, %v916_v7 }
 0xaac   :  { %2846 = vtanh.f32 %v917_v62  ;;  %v2493_v39 = vmul.f32 -1.442695, %v917_v62 }
 0xaad   :  { %2848 = vpow2.f32 %v2492_v8 }
 0xab9   :  { %v2847_v63 = vpop.eup %2846 }
 0xaba   :  { %936 = vrot.lane.b32.xlu0 %v2847_v63, %s3258_s7  ;;  %v2849_v10 = vpop.eup %2848 }
 0xabb   :  { %v924_v12 = vadd.f32 1.0, %v2849_v10 }
 0xabd   :  { %2850 = vrcp.f32 %v924_v12 }
 0xaca   :  { %v2851_v31 = vpop.eup %2850 }
 0xacb   :  { %v934_v17 = vmul.f32 %v2851_v31, %v932_v15 }
 0xb2c   :  { %v937_v60 = vpop.permute.xlu0 %936 }
 0xb2d   :  { %v939_v13 = vmul.f32 %v2851_v31, %v937_v60 }
 0xb2f   :  { %941 = vrot.lane.b32.xlu1 %v939_v13, %s3258_s7 }
 0xba1   :  { %v942_v19 = vpop.permute.xlu1 %941 }
 0xba2   :  { %v944_v28 = vadd.f32 %v942_v19, %v934_v17 }
 0xba4   :  { %2852 = vtanh.f32 %v944_v28 }
 0xba5   :  { %2854 = vpow2.f32 %v2493_v39 }
 0xbb1   :  { %v2853_v29 = vpop.eup %2852 }
 0xbb2   :  { %947 = vrot.lane.b32.xlu0 %v2853_v29, %s3258_s7  ;;  %v2855_v59 = vpop.eup %2854 }
 0xbb3   :  { %v925_v58 = vadd.f32 1.0, %v2855_v59 }
 0xbb5   :  { %2856 = vrcp.f32 %v925_v58 }
 0xbc2   :  { %v2857_v30 = vpop.eup %2856 }
 0xc24   :  { %v948_v32 = vpop.permute.xlu0 %947 }
 0xc25   :  { %v3745_v33 = vmul.f32 %v2857_v30, %v948_v32 }
 0xc27   :  { %2494 = vmatmul.mubr.msk.f32.vlgmr.msra.gmra.mxu0 %vm387_vm1, %v3745_v33 }
 0xc28   :  { %1203 = vmatpush1.msra.mxu0 %v3461_v2  ;;  %1250 = vmatprep.mubr.f32.mxu0 %v3257_v0 }
 0xc29   :  { %1204 = vmatprep.subr.mxu0 %v3466_v3 }
 0xc2a   :  { %1205 = vmatpush1.msra.mxu0 %v3472_v4 }
 0xc2b   :  { %1206 = vmatprep.subr.mxu0 %v3481_v6 }
 0xc2c   :  { %1207 = vmatpush1.msra.mxu0 %v3493_v9 }
 0xc2d   :  { %1208 = vmatprep.subr.mxu0 %v3502_v11 }
 0xc2e   :  { %1209 = vmatpush1.msra.mxu0 %v3514_v14 }
 0xc2f   :  { %1210 = vmatprep.subr.mxu0 %v3523_v16 }
 0xc30   :  { %1211 = vmatpush1.msra.mxu0 %v3532_v18 }
 0xc31   :  { %1212 = vmatprep.subr.mxu0 %v3538_v20 }
 0xc32   :  { %1213 = vmatpush1.msra.mxu0 %v3544_v21 }
 0xc33   :  { %1214 = vmatprep.subr.mxu0 %v3551_v22 }
 0xc34   :  { %1215 = vmatpush1.msra.mxu0 %v3557_v23  ;;  %v1047_v23 = vrot.slane %v944_v28, 6 }
 0xc35   :  { %1216 = vmatprep.subr.mxu0 %v3564_v24 }
 0xc36   :  { %1217 = vmatpush1.msra.mxu0 %v3571_v25 }
 0xce7   :  { %v1020_v0 = vpop.f32.mrf.mxu0 }
 0xce8   :  { %v1027_v9 = vrot.slane %v1020_v0, 6 }
 0xce9   :  { %v1022_v2 = vpop.f32.mrf.mxu0 }
 0xcea   :  { %v1028_v3 = vrot.slane %v1022_v2, 6  ;;  %v1031_v11 = vadd.f32 %v1027_v9, %v3740_v5 }
 0xcec   :  { %v1032_v4 = vadd.f32 %v1028_v3, %v3734_v57  ;;  %v2495_v14 = vmul.f32 -1.442695, %v1031_v11  ;;  %v1313_v11 = vld [vmem:[%s4034_s25 + $0x30] sm:$0xff] }
 0xcee   :  { %2858 = vtanh.f32 %v1032_v4  ;;  %v2496_v37 = vmul.f32 -1.442695, %v1032_v4 }
 0xcef   :  { %2860 = vpow2.f32 %v2495_v14  ;;  %v1311_v14 = vld [vmem:[%s4034_s25 + $0x20] sm:$0xff] }
 0xcfb   :  { %v2859_v6 = vpop.eup %2858 }
 0xcfc   :  { %1051 = vrot.lane.b32.xlu1 %v2859_v6, %s3258_s7  ;;  %v2861_v16 = vpop.eup %2860 }
 0xcfd   :  { %v1039_v18 = vadd.f32 1.0, %v2861_v16  ;;  %v1310_v16 = vld [vmem:[%s4034_s25 + $0x18] sm:$0xff] }
 0xcff   :  { %2862 = vrcp.f32 %v1039_v18  ;;  %v1309_v18 = vld [vmem:[%s4034_s25 + $0x10] sm:$0xff] }
 0xd0c   :  { %v2863_v20 = vpop.eup %2862 }
 0xd0d   :  { %v1049_v24 = vmul.f32 %v2863_v20, %v1047_v23 }
 0xd6e   :  { %v1052_v21 = vpop.permute.xlu1 %1051 }
 0xd6f   :  { %v1054_v22 = vmul.f32 %v2863_v20, %v1052_v21  ;;  %v1308_v20 = vld [vmem:[%s4034_s25 + $0x8] sm:$0xff] }
 0xd71   :  { %1056 = vrot.lane.b32.xlu0 %v1054_v22, %s3258_s7 }
 0xde3   :  { %v1057_v25 = vpop.permute.xlu0 %1056 }
 0xde4   :  { %v1059_v35 = vadd.f32 %v1057_v25, %v1049_v24  ;;  %v1307_v25 = vld [vmem:[%s4034_s25] sm:$0xff] }
 0xde6   :  { %2864 = vtanh.f32 %v1059_v35  ;;  %v1163_v61 = vrot.slane %v1059_v35, 6  ;;  %v1408_v35 = vld [vmem:[#allocation10 + $0x18] sm:$0xff] }
 0xde7   :  { %2866 = vpow2.f32 %v2496_v37  ;;  %2641 = vmatprep.subr.mxu0 %v1408_v35 }
 0xdf3   :  { %v2865_v36 = vpop.eup %2864 }
 0xdf4   :  { %1062 = vrot.lane.b32.xlu1 %v2865_v36, %s3258_s7  ;;  %v2867_v38 = vpop.eup %2866 }
 0xdf5   :  { %v1040_v41 = vadd.f32 1.0, %v2867_v38 }
 0xdf7   :  { %2868 = vrcp.f32 %v1040_v41 }
 0xe04   :  { %v2869_v42 = vpop.eup %2868 }
 0xe66   :  { %v1063_v43 = vpop.permute.xlu1 %1062 }
 0xe67   :  { %v1065_v44 = vmul.f32 %v2869_v42, %v1063_v43 }
 0xe69   :  { %v1067_v1 = vrot.slane %v1065_v44, 2  ;;  %v1304_v17 = vsel %vm1298_vm2, %v3745_v33, %v1065_v44 }
 0xe6b   :  { %2497 = vmatmul.mubr.msk.f32.vlgmr.msra.gmra.mxu1 %vm387_vm1, %v1067_v1 }
 0xe6c   :  { %2638 = vmatprep.mubr.msk.f32.mxu1 %vm387_vm1, %v3713_v55 }
 0xf2b   :  { %v1136_v45 = vpop.f32.mrf.mxu1 }
 0xf2c   :  { %v1143_v49 = vrot.slane %v1136_v45, 4  ;;  %v1407_v45 = vld [vmem:[#allocation10 + $0x10] sm:$0xff] }
 0xf2d   :  { %v1138_v46 = vpop.f32.mrf.mxu1 }
 0xf2e   :  { %v1144_v34 = vrot.slane %v1138_v46, 4  ;;  %v1147_v40 = vadd.f32 %v1143_v49, %v3740_v5  ;;  %v1406_v46 = vld [vmem:[#allocation10 + $0x8] sm:$0xff] }
 0xf30   :  { %v1148_v47 = vadd.f32 %v1144_v34, %v3734_v57  ;;  %v2498_v50 = vmul.f32 -1.442695, %v1147_v40  ;;  %v1405_v34 = vld [vmem:[#allocation10] sm:$0xff] }
 0xf32   :  { %2870 = vtanh.f32 %v1148_v47  ;;  %v2499_v10 = vmul.f32 -1.442695, %v1148_v47  ;;  %v1504_v47 = vld [vmem:[%s3997_s9 + $0x38] sm:$0xff] }
 0xf33   :  { %2872 = vpow2.f32 %v2498_v50 }
 0xf3f   :  { %v2871_v48 = vpop.eup %2870 }
 0xf40   :  { %1167 = vrot.lane.b32.xlu0 %v2871_v48, %s3258_s7  ;;  %v2873_v51 = vpop.eup %2872  ;;  %v2503_v48 = vld [vmem:[#allocation8] ss:$0 sm:$0xff] }
 0xf41   :  { %v1155_v52 = vadd.f32 1.0, %v2873_v51 }
 0xf43   :  { %2874 = vrcp.f32 %v1155_v52 }
 0xf50   :  { %v2875_v53 = vpop.eup %2874 }
 0xf51   :  { %v1165_v62 = vmul.f32 %v2875_v53, %v1163_v61  ;;  %v1501_v61 = vld [vmem:[%s3997_s9 + $0x20] sm:$0xff] }
 0xfb2   :  { %v1168_v54 = vpop.permute.xlu0 %1167 }
 0xfb3   :  { %v1170_v56 = vmul.f32 %v2875_v53, %v1168_v54  ;;  %v1503_v54 = vld [vmem:[%s3997_s9 + $0x30] sm:$0xff] }
 0xfb5   :  { %1172 = vrot.lane.b32.xlu1 %v1170_v56, %s3258_s7  ;;  %v1502_v56 = vld [vmem:[%s3997_s9 + $0x28] sm:$0xff] }
0x1027   :  { %v1173_v63 = vpop.permute.xlu1 %1172 }
0x1028   :  { %v1175_v7 = vadd.f32 %v1173_v63, %v1165_v62  ;;  %v1500_v62 = vld [vmem:[%s3997_s9 + $0x18] sm:$0xff]  ;;  %v1499_v63 = vld [vmem:[%s3997_s9 + $0x10] sm:$0xff] }
0x102a   :  { %2876 = vtanh.f32 %v1175_v7  ;;  %v1279_v21 = vrot.slane %v1175_v7, 6  ;;  %v1498_v7 = vld [vmem:[%s3997_s9 + $0x8] sm:$0xff] }
0x102b   :  { %2878 = vpow2.f32 %v2499_v10  ;;  %v1592_v10 = vld [vmem:[#allocation14 + $0x18] sm:$0xff] }
0x1037   :  { %v2877_v8 = vpop.eup %2876 }
0x1038   :  { %1178 = vrot.lane.b32.xlu0 %v2877_v8, %s3258_s7  ;;  %v2879_v12 = vpop.eup %2878  ;;  %v1497_v8 = vld [vmem:[%s3997_s9] sm:$0xff] }
0x1039   :  { %v1156_v31 = vadd.f32 1.0, %v2879_v12  ;;  %v1591_v12 = vld [vmem:[#allocation14 + $0x10] sm:$0xff] }
0x103b   :  { %2880 = vrcp.f32 %v1156_v31  ;;  %v1590_v31 = vld [vmem:[#allocation14 + $0x8] sm:$0xff] }
0x1048   :  { %v2881_v60 = vpop.eup %2880 }
0x10aa   :  { %v1179_v13 = vpop.permute.xlu0 %1178 }
0x10ab   :  { %v1181_v15 = vmul.f32 %v2881_v60, %v1179_v13  ;;  %v1589_v60 = vld [vmem:[#allocation14] sm:$0xff]  ;;  %v2506_v13 = vld [vmem:[#allocation11] ss:$0 sm:$0xff] }
0x10ad   :  { %v1183_v19 = vrot.slane %v1181_v15, 4  ;;  %v3781_v28 = vsel %vm1300_vm3, %v1304_v17, %v1181_v15 }
0x10af   :  { %2500 = vmatmul.mubr.msk.f32.vlgmr.msra.gmra.mxu0 %vm387_vm1, %v1183_v19 }
0x10b0   :  { %2642 = vmatpush3.msra.mxu0 %v1408_v35 }
0x10b1   :  { %2643 = vmatprep.subr.mxu0 %v1407_v45 }
0x10b2   :  { %2644 = vmatpush3.msra.mxu0 %v1407_v45 }
0x10b3   :  { %2645 = vmatprep.subr.mxu0 %v1406_v46 }
0x10b4   :  { %2646 = vmatpush3.msra.mxu0 %v1406_v46  ;;  %v1900_v46 = vld [vmem:[%s4001_s13 + $0x38] sm:$0xff] }
0x10b5   :  { %2647 = vmatprep.subr.mxu0 %v1405_v34 }
0x10b6   :  { %2648 = vmatpush3.msra.mxu0 %v1405_v34  ;;  %v1899_v34 = vld [vmem:[%s4001_s13 + $0x30] sm:$0xff] }
0x10b7   :  { %2652 = vmatprep.subr.mxu0 %v1504_v47 }
0x116f   :  { %v1252_v29 = vpop.f32.mrf.mxu0 }
0x1170   :  { %v1259_v32 = vrot.slane %v1252_v29, 2  ;;  %v2509_v29 = vld [vmem:[#allocation13] ss:$0 sm:$0xff] }
0x1171   :  { %v1254_v39 = vpop.f32.mrf.mxu0 }
0x1172   :  { %v1260_v59 = vrot.slane %v1254_v39, 2  ;;  %v1263_v0 = vadd.f32 %v1259_v32, %v3740_v5  ;;  %v1312_v5 = vld [vmem:[%s4034_s25 + $0x28] sm:$0xff] }
0x1174   :  { %v1264_v58 = vadd.f32 %v1260_v59, %v3734_v57  ;;  %v2501_v2 = vmul.f32 -1.442695, %v1263_v0  ;;  %v1314_v57 = vld [vmem:[%s4034_s25 + $0x38] sm:$0xff] }
0x1175   :  { %2622 = vmatprep.subr.mxu1 %v1314_v57 }
0x1176   :  { %2882 = vtanh.f32 %v1264_v58  ;;  %2623 = vmatpush3.msra.mxu1 %v1314_v57  ;;  %v2502_v37 = vmul.f32 -1.442695, %v1264_v58  ;;  %v1774_v57 = vand.u32 127, %v277_v26 }
0x1177   :  { %2884 = vpow2.f32 %v2501_v2  ;;  %2624 = vmatprep.subr.mxu1 %v1313_v11  ;;  %v2512_v2 = vld [vmem:[#allocation16] ss:$0 sm:$0xff] }
0x1178   :  { %2625 = vmatpush3.msra.mxu1 %v1313_v11  ;;  %v1769_v11 = vld [vmem:[#allocation5 + $0x8] sm:$0xff]  ;;  %vm1777_vm8 = vcmp.ne.s32.totalorder %v3612_v27, %v1774_v57 }
0x1179   :  { %2626 = vmatprep.subr.mxu1 %v1312_v5  ;;  %vm1776_vm5 = vcmp.gt.f32.partialorder %v1769_v11, 0.0  ;;  %v2178_v11 = vld [vmem:[%s4007_s19 + $0x8] sm:$0xff] }
0x117a   :  { %2627 = vmatpush3.msra.mxu1 %v1312_v5  ;;  %v1768_v5 = vld [vmem:[#allocation5] sm:$0xff] }
0x117b   :  { %2628 = vmatprep.subr.mxu1 %v1311_v14  ;;  %vm1775_vm7 = vcmp.gt.f32.partialorder %v1768_v5, 0.0  ;;  %v2177_v5 = vld [vmem:[%s4007_s19] sm:$0xff] }
0x117c   :  { %2629 = vmatpush3.msra.mxu1 %v1311_v14  ;;  %vm3868_vm11 = vmand %vm1775_vm7, %vm1777_vm8  ;;  %v2282_v14 = vld [vmem:[%s4009_s21 + $0x38] sm:$0xff] }
0x117d   :  { %2630 = vmatprep.subr.mxu1 %v1310_v16 }
0x117e   :  { %2631 = vmatpush3.msra.mxu1 %v1310_v16 }
0x117f   :  { %2632 = vmatprep.subr.mxu1 %v1309_v18 }
0x1180   :  { %2633 = vmatpush3.msra.mxu1 %v1309_v18  ;;  %v2527_v18 = vld [vmem:[#allocation23] ss:$0 sm:$0xff] }
0x1181   :  { %2634 = vmatprep.subr.mxu1 %v1308_v20 }
0x1182   :  { %2635 = vmatpush3.msra.mxu1 %v1308_v20 }
0x1183   :  { %v2883_v30 = vpop.eup %2882  ;;  %2636 = vmatprep.subr.mxu1 %v1307_v25 }
0x1184   :  { %1283 = vrot.lane.b32.xlu1 %v2883_v30, %s3258_s7  ;;  %v2885_v33 = vpop.eup %2884  ;;  %2637 = vmatpush3.msra.mxu1 %v1307_v25 }
0x1185   :  { %v1271_v3 = vadd.f32 1.0, %v2885_v33 }
0x1187   :  { %2886 = vrcp.f32 %v1271_v3 }
0x1194   :  { %v2887_v4 = vpop.eup %2886 }
0x1195   :  { %v1281_v22 = vmul.f32 %v2887_v4, %v1279_v21 }
0x11f6   :  { %v1284_v6 = vpop.permute.xlu1 %1283 }
0x11f7   :  { %v1286_v9 = vmul.f32 %v2887_v4, %v1284_v6 }
0x11f9   :  { %1288 = vrot.lane.b32.xlu0 %v1286_v9, %s3258_s7  ;;  %v1772_v9 = vadd.s32 8, %v3612_v27 }
0x11fb   :  { %vm1778_vm6 = vcmp.ne.s32.totalorder %v1772_v9, %v1774_v57  ;;  %v2179_v57 = vld [vmem:[%s4007_s19 + $0x10] sm:$0xff] }
0x11fc   :  { %vm3864_vm9 = vmand %vm1776_vm5, %vm1778_vm6 }
0x126b   :  { %v1289_v23 = vpop.permute.xlu0 %1288 }
0x126c   :  { %v1291_v24 = vadd.f32 %v1289_v23, %v1281_v22 }
0x126e   :  { %2888 = vtanh.f32 %v1291_v24 }
0x126f   :  { %2890 = vpow2.f32 %v2502_v37 }
0x127b   :  { %v2889_v36 = vpop.eup %2888 }
0x127c   :  { %1294 = vrot.lane.b32.xlu1 %v2889_v36, %s3258_s7  ;;  %v2891_v38 = vpop.eup %2890 }
0x127d   :  { %v1272_v41 = vadd.f32 1.0, %v2891_v38 }
0x127f   :  { %2892 = vrcp.f32 %v1272_v41 }
0x128c   :  { %v2893_v42 = vpop.eup %2892 }
0x12ee   :  { %v1295_v43 = vpop.permute.xlu1 %1294 }
0x12ef   :  { %v1297_v44 = vmul.f32 %v2893_v42, %v1295_v43 }
0x12f1   :  { %v3815_v1 = vsel %vm1302_vm4, %v3781_v28, %v1297_v44 }
0x12f2   :  { %2639 = vmatmul.mubr.msk.f32.vlgmr.msra.gmra.mxu1 %vm387_vm1, %v3815_v1 }
0x13b2   :  { %v2640_v49 = vpop.f32.mrf.mxu1 }
0x13b3   :  { %v1400_v40 = vadd.f32 %v2640_v49, %v2503_v48  ;;  %v1896_v49 = vld [vmem:[%s4001_s13 + $0x18] sm:$0xff] }
0x13b4   :  { %v1394_v50 = vpop.f32.mrf.mxu1 }
0x13b5   :  { %v1395_v51 = vadd.f32 %v2503_v48, %v1394_v50  ;;  %v1404_v53 = vmax.f32 %v1400_v40, 0.0  ;;  %v1897_v48 = vld [vmem:[%s4001_s13 + $0x20] sm:$0xff]  ;;  %v1895_v40 = vld [vmem:[%s4001_s13 + $0x10] sm:$0xff] }
0x13b7   :  { %v1403_v52 = vmax.f32 %v1395_v51, 0.0 }
0x13b9   :  { %2649 = vmatprep.mubr.msk.f32.mxu0 %vm287_vm0, %v1403_v52 }
0x13ba   :  { %2650 = vmatmul.mubr.msk.f32.vlgmr.msra.gmra.mxu0 %vm287_vm0, %v1404_v53 }
0x13bb   :  { %2653 = vmatpush3.msra.mxu0 %v1504_v47  ;;  %2668 = vmatprep.mubr.msk.f32.mxu0 %vm387_vm1, %v3713_v55  ;;  %v1898_v47 = vld [vmem:[%s4001_s13 + $0x28] sm:$0xff] }
0x13bc   :  { %2654 = vmatprep.subr.mxu0 %v1503_v54 }
0x13bd   :  { %2655 = vmatpush3.msra.mxu0 %v1503_v54 }
0x13be   :  { %2656 = vmatprep.subr.mxu0 %v1502_v56 }
0x13bf   :  { %2657 = vmatpush3.msra.mxu0 %v1502_v56 }
0x13c0   :  { %2658 = vmatprep.subr.mxu0 %v1501_v61 }
0x13c1   :  { %2659 = vmatpush3.msra.mxu0 %v1501_v61 }
0x13c2   :  { %2660 = vmatprep.subr.mxu0 %v1500_v62 }
0x13c3   :  { %2661 = vmatpush3.msra.mxu0 %v1500_v62 }
0x13c4   :  { %2662 = vmatprep.subr.mxu0 %v1499_v63 }
0x13c5   :  { %2663 = vmatpush3.msra.mxu0 %v1499_v63  ;;  %v1894_v63 = vld [vmem:[%s4001_s13 + $0x8] sm:$0xff] }
0x13c6   :  { %2664 = vmatprep.subr.mxu0 %v1498_v7 }
0x13c7   :  { %2665 = vmatpush3.msra.mxu0 %v1498_v7  ;;  %v1893_v7 = vld [vmem:[%s4001_s13] sm:$0xff] }
0x13c8   :  { %2666 = vmatprep.subr.mxu0 %v1497_v8 }
0x13c9   :  { %2667 = vmatpush3.msra.mxu0 %v1497_v8 }
0x13ca   :  { %2669 = vmatmul.mubr.msk.f32.vlgmr.msra.gmra.mxu0 %vm387_vm1, %v3815_v1  ;;  %2671 = vmatprep.subr.mxu0 %v1592_v10 }
0x13cb   :  { %2672 = vmatpush3.msra.mxu0 %v1592_v10 }
0x13cc   :  { %2673 = vmatprep.subr.mxu0 %v1591_v12 }
0x13cd   :  { %2674 = vmatpush3.msra.mxu0 %v1591_v12  ;;  %v1994_v12 = vld [vmem:[#allocation19 + $0x18] sm:$0xff] }
0x13ce   :  { %2675 = vmatprep.subr.mxu0 %v1590_v31 }
0x13cf   :  { %2676 = vmatpush3.msra.mxu0 %v1590_v31  ;;  %v1993_v31 = vld [vmem:[#allocation19 + $0x10] sm:$0xff] }
0x13d0   :  { %2677 = vmatprep.subr.mxu0 %v1589_v60 }
0x13d1   :  { %2678 = vmatpush3.msra.mxu0 %v1589_v60  ;;  %v1992_v60 = vld [vmem:[#allocation19 + $0x8] sm:$0xff] }
0x13d2   :  { %2689 = vmatprep.subr.mxu0 %v3815_v1 }
0x147a   :  { %v2651_v15 = vpop.f32.mrf.mxu0 }
0x147b   :  { %v1494_v17 = vadd.f32 %v2651_v15, %v2506_v13  ;;  %v2086_v15 = vld [vmem:[#allocation22 + $0x18] sm:$0xff] }
0x147c   :  { %v1488_v19 = vpop.f32.mrf.mxu0 }
0x147d   :  { %v1489_v28 = vadd.f32 %v2506_v13, %v1488_v19  ;;  %v1991_v13 = vld [vmem:[#allocation19] sm:$0xff] }
0x147f   :  { %2686 = vmatprep.mubr.msk.f32.mxu1 %vm287_vm0, %v1489_v28 }
0x148a   :  { %v2670_v39 = vpop.f32.mrf.mxu0 }
0x148b   :  { %v1584_v59 = vadd.f32 %v2670_v39, %v2509_v29 }
0x148c   :  { %v1578_v58 = vpop.f32.mrf.mxu0 }
0x148d   :  { %v1579_v30 = vadd.f32 %v2509_v29, %v1578_v58  ;;  %v1588_v0 = vmax.f32 %v1584_v59, 0.0 }
0x148f   :  { %v1587_v32 = vmax.f32 %v1579_v30, 0.0  ;;  %v2085_v30 = vld [vmem:[#allocation22 + $0x10] sm:$0xff] }
0x1491   :  { %2679 = vmatprep.mubr.msk.f32.mxu0 %vm287_vm0, %v1587_v32  ;;  %v2084_v32 = vld [vmem:[#allocation22 + $0x8] sm:$0xff] }
0x1492   :  { %2680 = vmatmul.mubr.msk.f32.vlgmr.msra.gmra.mxu0 %vm287_vm0, %v1588_v0  ;;  %v2083_v0 = vld [vmem:[#allocation22] sm:$0xff] }
0x1493   :  { %2690 = vmatpush3.msra.mxu0 %v3815_v1 }
0x1494   :  { %2691 = vmatprep.subr.mxu0 %v3713_v55 }
0x1495   :  { %2692 = vmatpush3.msra.mxu0 %v3713_v55 }
0x1496   :  { %2715 = vmatprep.subr.mxu0 %v1994_v12 }
0x1552   :  { %v2681_v33 = vpop.f32.mrf.mxu0 }
0x1553   :  { %v1678_v3 = vadd.f32 %v2681_v33, %v2512_v2 }
0x1554   :  { %v1672_v4 = vpop.f32.mrf.mxu0 }
0x1555   :  { %v1673_v6 = vadd.f32 %v2512_v2, %v1672_v4  ;;  %2682 = vmatprep.subr.msk.mxu1 %vm287_vm0, %v1678_v3  ;;  %v2180_v2 = vld [vmem:[%s4007_s19 + $0x18] sm:$0xff] }
0x1556   :  { %2683 = vmatpush3.xpose.msk.msra.mxu1 %vm287_vm0, %v1678_v3  ;;  %v2524_v3 = vld [vmem:[#allocation20] ss:$0 sm:$0xff] }
0x1557   :  { %2684 = vmatprep.subr.msk.mxu1 %vm287_vm0, %v1673_v6 }
0x155a   :  { %2685 = vmatpush3.xpose.msk.msra.mxu1 %vm287_vm0, %v1673_v6 }
0x155b   :  { %2696 = vmatprep.subr.mxu1 %v1900_v46 }
0x155d   :  { %2687 = vmatmul.mubr.msk.f32.vlgmr.msra.gmra.mxu1 %vm287_vm0, %v1494_v17  ;;  %v2521_v17 = vld [vmem:[#allocation17] ss:$0 sm:$0xff] }
0x155e   :  { %2697 = vmatpush3.msra.mxu1 %v1900_v46 }
0x155f   :  { %2698 = vmatprep.subr.mxu1 %v1899_v34 }
0x1560   :  { %2699 = vmatpush3.msra.mxu1 %v1899_v34 }
0x1561   :  { %2700 = vmatprep.subr.mxu1 %v1898_v47 }
0x1562   :  { %2701 = vmatpush3.msra.mxu1 %v1898_v47 }
0x1563   :  { %2702 = vmatprep.subr.mxu1 %v1897_v48 }
0x1564   :  { %2703 = vmatpush3.msra.mxu1 %v1897_v48 }
0x1565   :  { %2704 = vmatprep.subr.mxu1 %v1896_v49 }
0x1566   :  { %2705 = vmatpush3.msra.mxu1 %v1896_v49 }
0x1567   :  { %2706 = vmatprep.subr.mxu1 %v1895_v40 }
0x1568   :  { %2707 = vmatpush3.msra.mxu1 %v1895_v40 }
0x1569   :  { %2708 = vmatprep.subr.mxu1 %v1894_v63 }
0x156a   :  { %2709 = vmatpush3.msra.mxu1 %v1894_v63 }
0x156b   :  { %2710 = vmatprep.subr.mxu1 %v1893_v7 }
0x156c   :  { %2711 = vmatpush3.msra.mxu1 %v1893_v7 }
0x156d   :  { %2737 = vmatprep.subr.mxu1 %v2180_v2 }
0x161d   :  { %v2688_v16 = vpop.f32.mrf.mxu1 }
0x161e   :  { %v1782_v26 = vsel %vm3864_vm9, %v2688_v16, -1e+30  ;;  %v2286_v16 = vld [vmem:[#allocation25 + $0x18] sm:$0xff] }
0x161f   :  { %v1759_v20 = vpop.f32.mrf.mxu1  ;;  %v1787_v21 = vsel %vm1783_vm10, %v1782_v26, -inf }
0x1620   :  { %v1781_v22 = vsel %vm3868_vm11, %v1759_v20, -1e+30  ;;  %1788 = vmax.xlane.f32.xlu1 %v1787_v21 }
0x1621   :  { %v1784_v27 = vsel %vm1783_vm10, %v1781_v22, -inf }
0x1622   :  { %1785 = vmax.xlane.f32.xlu0 %v1784_v27 }
0x16a9   :  { %v1789_v23 = vpop.xlane.xlu1 %1788 }
0x16aa   :  { %v1791_v24 = vsub.f32 %v1782_v26, %v1789_v23 }
0x16ab   :  { %v1786_v25 = vpop.xlane.xlu0 %1785 }
0x16ac   :  { %v1794_v35 = vmul.f32 1.442695, %v1791_v24  ;;  %v1790_v36 = vsub.f32 %v1781_v22, %v1786_v25  ;;  %v2281_v24 = vld [vmem:[%s4009_s21 + $0x30] sm:$0xff]  ;;  %v2280_v25 = vld [vmem:[%s4009_s21 + $0x28] sm:$0xff] }
0x16ae   :  { %v1792_v37 = vmul.f32 1.442695, %v1790_v36  ;;  %2894 = vpow2.f32 %v1794_v35  ;;  %v2279_v35 = vld [vmem:[%s4009_s21 + $0x20] sm:$0xff]  ;;  %v2278_v36 = vld [vmem:[%s4009_s21 + $0x18] sm:$0xff] }
0x16b0   :  { %2896 = vpow2.f32 %v1792_v37  ;;  %v2276_v37 = vld [vmem:[%s4009_s21 + $0x8] sm:$0xff] }
0x16bb   :  { %v2895_v38 = vpop.eup %2894 }
0x16bc   :  { %v1797_v44 = vsel %vm3864_vm9, %v2895_v38, 0.0  ;;  %v2275_v38 = vld [vmem:[%s4009_s21] sm:$0xff] }
0x16bd   :  { %v2897_v41 = vpop.eup %2896  ;;  %v1801_v45 = vsel %vm1783_vm10, %v1797_v44, 0.0 }
0x16be   :  { %v1796_v42 = vsel %vm3868_vm11, %v2897_v41, 0.0  ;;  %v2285_v41 = vld [vmem:[#allocation25 + $0x10] sm:$0xff] }
0x16bf   :  { %v1798_v43 = vsel %vm1783_vm10, %v1796_v42, 0.0 }
0x16c0   :  { %1799 = vadd.xlane.f32.xlu0 %v1798_v43  ;;  %v2283_v43 = vld [vmem:[#allocation25] sm:$0xff] }
0x16c4   :  { %1802 = vadd.xlane.f32.xlu0 %v1801_v45 }
0x1749   :  { %v3902_v50 = vpop.xlane.xlu0 %1799 }
0x174a   :  { %vm1804_vm12 = vcmp.gt.f32.partialorder %v3902_v50, 0.0 }
0x174b   :  { %v1806_v51 = vsel %vm1804_vm12, %v3902_v50, 1.0 }
0x174c   :  { %2898 = vrcp.f32 %v1806_v51  ;;  %v2537_v51 = vld [vmem:[%s4011_s23] ss:$0 sm:$0xff] }
0x174d   :  { %v3908_v52 = vpop.xlane.xlu0 %1802 }
0x174e   :  { %vm1805_vm13 = vcmp.gt.f32.partialorder %v3908_v52, 0.0 }
0x174f   :  { %v1807_v53 = vsel %vm1805_vm13, %v3908_v52, 1.0 }
0x1750   :  { %2900 = vrcp.f32 %v1807_v53 }
0x1759   :  { %v2899_v54 = vpop.eup %2898 }
0x175a   :  { %v1810_v56 = vmul.f32 %v2899_v54, %v1796_v42  ;;  %v2284_v42 = vld [vmem:[#allocation25 + $0x8] sm:$0xff] }
0x175c   :  { %2693 = vmatprep.mubr.msk.f32.mxu0 %vm1783_vm10, %v1810_v56 }
0x175d   :  { %v2901_v61 = vpop.eup %2900 }
0x175e   :  { %v1811_v62 = vmul.f32 %v2901_v61, %v1797_v44  ;;  %v2530_v44 = vld [vmem:[%s4008_s20] ss:$0 sm:$0xff]  ;;  %s3259_s20 = smov [#allocation26]  }
0x175f   :  { %s2459_s25 = sshll.u32 %s3259_s20, 4  ;;  %s2460_s25 = int_to_ptr.vmem [resolvable:$true] %s2459_s25 }
0x1760   :  { %2694 = vmatmul.mubr.msk.f32.vlgmr.msra.gmra.mxu0 %vm1783_vm10, %v1811_v62  ;;  %s3202_s28 = scalar_lea.vmem %s2460_s25, 256  ;;  %p3207_p6 = scmp.lt.s32.totalorder %s2460_s25, %s2460_s25 }
0x1761   :  { %2716 = vmatpush3.msra.mxu0 %v1994_v12  ;;  %p3203_p5 = scmp.ne.s32.totalorder %s2460_s25, %s3202_s28  ;;  %p3208_p7 = scmp.lt.s32.totalorder %s3202_s28, %s3202_s28 }
0x1762   :  { %2717 = vmatprep.subr.mxu0 %v1993_v31 }
0x1763   :  { %2718 = vmatpush3.msra.mxu0 %v1993_v31  ;;  %p3209_p8 = por %p3208_p7, %p3207_p6 }
0x1764   :  { %2719 = vmatprep.subr.mxu0 %v1992_v60 }
0x1765   :  { %2720 = vmatpush3.msra.mxu0 %v1992_v60  ;;  %p3210_p9 = pnand %p3209_p8, %p3203_p5 }
0x1766   :  { %2721 = vmatprep.subr.mxu0 %v1991_v13 }
0x1767   :  { %2722 = vmatpush3.msra.mxu0 %v1991_v13 }
0x1768   :  { %2726 = vmatprep.subr.mxu0 %v2086_v15 }
0x1820   :  { %v2695_v8 = vpop.f32.mrf.mxu0 }
0x1822   :  { %v1884_v10 = vpop.f32.mrf.mxu0 }
0x1823   :  { %2712 = vmatprep.mubr.msk.f32.mxu1 %vm387_vm1, %v1884_v10 }
0x1824   :  { %2713 = vmatmul.mubr.msk.f32.vlgmr.msra.gmra.mxu1 %vm387_vm1, %v2695_v8 }
0x1825   :  { %2738 = vmatpush3.msra.mxu1 %v2180_v2 }
0x1826   :  { %2739 = vmatprep.subr.mxu1 %v2179_v57 }
0x1827   :  { %2740 = vmatpush3.msra.mxu1 %v2179_v57 }
0x1828   :  { %2741 = vmatprep.subr.mxu1 %v2178_v11 }
0x1829   :  { %2742 = vmatpush3.msra.mxu1 %v2178_v11 }
0x182a   :  { %2743 = vmatprep.subr.mxu1 %v2177_v5 }
0x182b   :  { %2744 = vmatpush3.msra.mxu1 %v2177_v5 }
0x182c   :  { %2759 = vmatprep.subr.mxu1 %v2282_v14 }
0x18e4   :  { %v2714_v19 = vpop.f32.mrf.mxu1 }
0x18e5   :  { %v1986_v28 = vadd.f32 %v2714_v19, %v2521_v17 }
0x18e6   :  { %v1980_v29 = vpop.f32.mrf.mxu1 }
0x18e7   :  { %v1981_v39 = vadd.f32 %v2521_v17, %v1980_v29  ;;  %v1990_v58 = vmax.f32 %v1986_v28, 0.0 }
0x18e9   :  { %v1989_v59 = vmax.f32 %v1981_v39, 0.0 }
0x18eb   :  { %2723 = vmatprep.mubr.msk.f32.mxu0 %vm287_vm0, %v1989_v59 }
0x18ec   :  { %2724 = vmatmul.mubr.msk.f32.vlgmr.msra.gmra.mxu0 %vm287_vm0, %v1990_v58 }
0x18ed   :  { %2727 = vmatpush3.msra.mxu0 %v2086_v15 }
0x18ee   :  { %2728 = vmatprep.subr.mxu0 %v2085_v30 }
0x18ef   :  { %2729 = vmatpush3.msra.mxu0 %v2085_v30 }
0x18f0   :  { %2730 = vmatprep.subr.mxu0 %v2084_v32 }
0x18f1   :  { %2731 = vmatpush3.msra.mxu0 %v2084_v32 }
0x18f2   :  { %2732 = vmatprep.subr.mxu0 %v2083_v0 }
0x18f3   :  { %2733 = vmatpush3.msra.mxu0 %v2083_v0 }
0x18f4   :  { %2748 = vmatprep.subr.mxu0 %v2286_v16 }
0x19ac   :  { %v2725_v33 = vpop.f32.mrf.mxu0 }
0x19ad   :  { %v2080_v9 = vadd.f32 %v2725_v33, %v2524_v3 }
0x19ae   :  { %v2074_v4 = vpop.f32.mrf.mxu0 }
0x19af   :  { %v2075_v6 = vadd.f32 %v2524_v3, %v2074_v4 }
0x19b1   :  { %2734 = vmatprep.mubr.msk.f32.mxu0 %vm287_vm0, %v2075_v6 }
0x19b2   :  { %2735 = vmatmul.mubr.msk.f32.vlgmr.msra.gmra.mxu0 %vm287_vm0, %v2080_v9 }
0x19b3   :  { %2749 = vmatpush3.msra.mxu0 %v2286_v16 }
0x19b4   :  { %2750 = vmatprep.subr.mxu0 %v2285_v41 }
0x19b5   :  { %2751 = vmatpush3.msra.mxu0 %v2285_v41 }
0x19b6   :  { %2752 = vmatprep.subr.mxu0 %v2284_v42 }
0x19b7   :  { %2753 = vmatpush3.msra.mxu0 %v2284_v42 }
0x19b8   :  { %2754 = vmatprep.subr.mxu0 %v2283_v43 }
0x19b9   :  { %2755 = vmatpush3.msra.mxu0 %v2283_v43 }
0x1a72   :  { %v2736_v26 = vpop.f32.mrf.mxu0 }
0x1a73   :  { %v2172_v20 = vadd.f32 %v2736_v26, %v2527_v18 }
0x1a74   :  { %v2166_v21 = vpop.f32.mrf.mxu0 }
0x1a75   :  { %v2167_v22 = vadd.f32 %v2527_v18, %v2166_v21  ;;  %v2176_v23 = vmax.f32 %v2172_v20, 0.0 }
0x1a77   :  { %v2175_v27 = vmax.f32 %v2167_v22, 0.0 }
0x1a79   :  { %2745 = vmatprep.mubr.msk.f32.mxu1 %vm287_vm0, %v2175_v27 }
0x1a7a   :  { %2746 = vmatmul.mubr.msk.f32.vlgmr.msra.gmra.mxu1 %vm287_vm0, %v2176_v23 }
0x1a7b   :  { %2760 = vmatpush3.msra.mxu1 %v2282_v14  ;;  %2775 = vmatprep.mubr.msk.f32.mxu1 %vm387_vm1, %v3713_v55  ;;  %v2277_v55 = vld [vmem:[%s4009_s21 + $0x10] sm:$0xff] }
0x1a7c   :  { %2761 = vmatprep.subr.mxu1 %v2281_v24 }
0x1a7d   :  { %2762 = vmatpush3.msra.mxu1 %v2281_v24 }
0x1a7e   :  { %2763 = vmatprep.subr.mxu1 %v2280_v25 }
0x1a7f   :  { %2764 = vmatpush3.msra.mxu1 %v2280_v25 }
0x1a80   :  { %2765 = vmatprep.subr.mxu1 %v2279_v35 }
0x1a81   :  { %2766 = vmatpush3.msra.mxu1 %v2279_v35 }
0x1a82   :  { %2767 = vmatprep.subr.mxu1 %v2278_v36 }
0x1a83   :  { %2768 = vmatpush3.msra.mxu1 %v2278_v36 }
0x1a84   :  { %2769 = vmatprep.subr.mxu1 %v2277_v55 }
0x1a85   :  { %2770 = vmatpush3.msra.mxu1 %v2277_v55 }
0x1a86   :  { %2771 = vmatprep.subr.mxu1 %v2276_v37 }
0x1a87   :  { %2772 = vmatpush3.msra.mxu1 %v2276_v37 }
0x1a88   :  { %2773 = vmatprep.subr.mxu1 %v2275_v38 }
0x1a89   :  { %2774 = vmatpush3.msra.mxu1 %v2275_v38 }
0x1a8a   :  { %2776 = vmatmul.mubr.msk.f32.vlgmr.msra.gmra.mxu1 %vm387_vm1, %v3815_v1 }
0x1b3a   :  { %v2747_v45 = vpop.f32.mrf.mxu1 }
0x1b3b   :  { %v2266_v46 = vadd.f32 %v2747_v45, %v2530_v44 }
0x1b3c   :  { %v2260_v34 = vpop.f32.mrf.mxu1 }
0x1b3d   :  { %v2261_v47 = vadd.f32 %v2530_v44, %v2260_v34  ;;  %v2274_v48 = vsel %vm1805_vm13, %v2266_v46, 0.0 }
0x1b3f   :  { %v2273_v1 = vsel %vm1804_vm12, %v2261_v47, 0.0 }
0x1b40   :  { %2756 = vmatprep.mubr.msk.f32.mxu0 %vm287_vm0, %v2273_v1 }
0x1b41   :  { %2757 = vmatmul.mubr.msk.f32.vlgmr.msra.gmra.mxu0 %vm287_vm0, %v2274_v48 }
0x1b4a   :  { %v2777_v49 = vpop.f32.mrf.mxu1 }
0x1b4c   :  { %v2434_v54 = vpop.f32.mrf.mxu1 }
0x1c01   :  { %v2758_v40 = vpop.f32.mrf.mxu0 }
0x1c02   :  { %v2440_v53 = vadd.f32 %v2777_v49, %v2758_v40 }
0x1c03   :  { %v2359_v56 = vpop.f32.mrf.mxu0 }
0x1c04   :  { %v2451_v50 = vadd.f32 %v2537_v51, %v2440_v53  ;;  %v2435_v61 = vadd.f32 %v2434_v54, %v2359_v56 }
0x1c06   :  { %2453 = vst [vmem:[#allocation26 + $0x8] sm:$0xff] %v2451_v50  ;;  %v2450_v52 = vadd.f32 %v2537_v51, %v2435_v61 }
0x1c08   :  { %2452 = vst [vmem:[#allocation26] sm:$0xff] %v2450_v52 }
0x1c09   :  { %3213 = shalt.err (!%p3210_p9)
}
0x1c0a   :  { %s4039_s5 = sld [smem:[#allocation45_spill]] }
0x1c10   :  { %2465 = dma.vmem_to_hbm [thread:$0]  %s2460_s25, 256, %s4039_s5, [#allocation4], %s3242_s2, %s3242_s2, %s3243_s29  }
0x1c11   :  { %3238 = dma.done.wait [#allocation4], 256  }
0x1c12   :  { %3239 = vsyncadd [#allocation4], 4294967040 }
0x1c13   :  { %2469 = vsyncpa [#allocation3], 1 }
0x1c14   :  { %2470 = vsyncpa [#allocation6], 1 }
0x1c15   :  { %2471 = vsyncpa [#allocation9], 1 }
0x1c16   :  { %2472 = vsyncpa [#allocation12], 1 }
0x1c17   :  { %2473 = vsyncpa [#allocation15], 1 }
0x1c18   :  { %2474 = vsyncpa [#allocation18], 1 }
0x1c19   :  { %2475 = vsyncpa [#allocation21], 1 }
0x1c1a   :  { %2476 = vsyncpa [#allocation24], 1 }
0x1c1b   :  { %2477 = vsyncpa [#allocation4], 1 }

</bundles_post_ra>
